<compile_context>
chip_gen: v7x
topology: tpu7x:2x2x1
jax: 0.10.0
libtpu: 0.0.40
codegen_flags: <defaults>
</compile_context>

<pallas_src>
import functools

import jax
import jax.numpy as jnp
import numpy as np
from jax.experimental import pallas as pl
from jax.experimental.pallas import tpu as pltpu


# ----------------------------- Pallas kernel -------------------------------
def _autoencoder_kernel(*refs, relu_flags):
    """Fused 6-layer forward.

    refs layout: x_ref, (w1, b1), ..., (w6, b6), enc_ref, dec_ref
    Each layer computes  h = relu?(h @ w + b)  with BN already folded into
    (w, b).  All intermediates live in VMEM/vregs; only the encoder output
    (layer 3) and the final decoder output are stored.
    """
    n_layers = len(relu_flags)
    x_ref = refs[0]
    wb_refs = refs[1:1 + 2 * n_layers]
    enc_ref, dec_ref = refs[-2], refs[-1]

    h = x_ref[...].astype(jnp.float32)
    for li, relu in enumerate(relu_flags):
        w_ref = wb_refs[2 * li]
        b_ref = wb_refs[2 * li + 1]
        # Big layers keep bf16 weights: cast activation to bf16 for the MXU,
        # accumulate in f32.  Small f32 layers stay fully f32.
        lhs = h if w_ref.dtype == jnp.float32 else h.astype(w_ref.dtype)
        z = jnp.dot(lhs, w_ref[...], preferred_element_type=jnp.float32)
        z = z + b_ref[...]                     # f32 epilogue (BN folded in)
        if relu:
            z = jnp.maximum(z, 0.0)
        h = z
        if li == 2:                            # end of encoder
            enc_ref[...] = h.astype(enc_ref.dtype)
    dec_ref[...] = h.astype(dec_ref.dtype)


def autoencoder_forward(params, x, *, batch_blocks=None):
    """Returns (encoded, decoded) like the PyTorch module, via one Pallas call."""
    M, D = x.shape
    n_layers = len(params)
    enc_dim = params[2]["w"].shape[1]
    relu_flags = tuple(bool(p["relu"]) for p in params)

    # Real layer-to-layer dimension chaining check (old assert was a tautology).
    prev = D
    for li, p in enumerate(params):
        kin, kout = p["w"].shape
        assert kin == prev, f"layer {li}: in-dim {kin} != previous out-dim {prev}"
        assert p["b"].shape == (1, kout), f"layer {li}: bad bias shape {p['b'].shape}"
        prev = kout
    assert prev == D, "decoder output must map back to input_size"

    if batch_blocks is None:
        # v7x has 2 TensorCores: split the batch across a "parallel" grid axis
        # once each block still meets the 8-sublane f32 tile (batch >= 16).
        batch_blocks = 2 if (M >= 16 and M % 16 == 0) else 1
    bm = M // batch_blocks

    flat_inputs = [x]
    flops = 0
    bytes_accessed = x.size * x.dtype.itemsize
    for p in params:
        flat_inputs += [p["w"], p["b"]]
        kin, kout = p["w"].shape
        flops += 2 * M * kin * kout
        bytes_accessed += p["w"].size * p["w"].dtype.itemsize
        bytes_accessed += p["b"].size * p["b"].dtype.itemsize
    bytes_accessed += M * enc_dim * x.dtype.itemsize + M * D * x.dtype.itemsize

    kernel = functools.partial(_autoencoder_kernel, relu_flags=relu_flags)
    out_shape = (
        jax.ShapeDtypeStruct((M, enc_dim), x.dtype),
        jax.ShapeDtypeStruct((M, D), x.dtype),
    )
    out_specs = [
        pl.BlockSpec((bm, enc_dim), lambda i: (i, 0)),
        pl.BlockSpec((bm, D), lambda i: (i, 0)),
    ]
    x_spec = pl.BlockSpec((bm, D), lambda i: (i, 0))

    def build(single_buffer_weights):
        wb_specs = []
        for p in params:
            for a in (p["w"], p["b"]):
                if single_buffer_weights:
                    # One grid step over the weights -> a second pipeline
                    # buffer is pure VMEM waste; request single-buffering.
                    wb_specs.append(
                        pl.BlockSpec(a.shape, lambda i: (0, 0),
                                     pipeline_mode=pl.Buffered(1)))
                else:
                    wb_specs.append(pl.BlockSpec(a.shape, lambda i: (0, 0)))
        return pl.pallas_call(
            kernel,
            out_shape=out_shape,
            grid_spec=pl.GridSpec(
                grid=(batch_blocks,),
                in_specs=[x_spec] + wb_specs,
                out_specs=out_specs,
            ),
            compiler_params=pltpu.CompilerParams(
                dimension_semantics=("parallel",),
            ),
            cost_estimate=pl.CostEstimate(
                flops=flops, transcendentals=0, bytes_accessed=bytes_accessed),
        )

    try:
        encoded, decoded = jax.block_until_ready(build(True)(*flat_inputs))
    except Exception:
        # pipeline_mode / Buffered(1) not supported on this jax build -> use
        # default double-buffering (footprint ~2x weights, still tiny here).
        encoded, decoded = jax.block_until_ready(build(False)(*flat_inputs))
    return encoded, decoded


# --------------------------- parameter creation -----------------------------
def _linear_params(key, in_f, out_f):
    """Deterministic init mimicking PyTorch nn.Linear (uniform +-1/sqrt(fan_in))."""
    kw, kb = jax.random.split(key)
    bound = 1.0 / np.sqrt(in_f)
    w = jax.random.uniform(kw, (out_f, in_f), jnp.float32, -bound, bound)
    b = jax.random.uniform(kb, (out_f,), jnp.float32, -bound, bound)
    return w, b


def _bn_params(key, num_f, eps=1e-5):
    """Eval-mode BatchNorm1d as an affine (scale, shift) pair."""
    k1, k2, k3 = jax.random.split(key, 3)
    gamma = 1.0 + 0.1 * jax.random.normal(k1, (num_f,), jnp.float32)
    beta = 0.1 * jax.random.normal(k2, (num_f,), jnp.float32)
    r_mean = 0.05 * jax.random.normal(k3, (num_f,), jnp.float32)
    r_var = jnp.ones((num_f,), jnp.float32)
    scale = gamma / jnp.sqrt(r_var + eps)
    shift = beta - r_mean * scale
    return scale, shift


def make_autoencoder_params(key, input_size, encoding_size, *,
                            bf16_min_elems=32 * 1024):
    h1 = min(input_size // 8, 2048)
    h2 = min(input_size // 32, 512)
    dims = [
        # (in, out, has_bn, relu)
        (input_size, h1, True, True),      # encoder L1 + BN + ReLU (+Dropout)
        (h1, h2, True, True),              # encoder L2 + BN + ReLU (+Dropout)
        (h2, encoding_size, True, False),  # encoder L3 + BN
        (encoding_size, h2, True, True),   # decoder L1 + BN + ReLU (+Dropout)
        (h2, h1, True, True),              # decoder L2 + BN + ReLU (+Dropout)
        (h1, input_size, False, False),    # decoder L3 (no BN, no act)
    ]
    params = []
    keys = jax.random.split(key, len(dims))
    for k, (fin, fout, has_bn, relu) in zip(keys, dims):
        kl, kbn = jax.random.split(k)
        w, b = _linear_params(kl, fin, fout)
        w_t = jnp.asarray(w.T)                       # (in, out) for x @ W^T
        if has_bn:
            scale, shift = _bn_params(kbn, fout)
        else:
            scale = jnp.ones((fout,), jnp.float32)
            shift = jnp.zeros((fout,), jnp.float32)
        # Fold BN affine into the linear layer:  (x@W^T + b)*s + sh
        #   == x @ (W^T * s) + (b*s + sh)
        w_folded = w_t * scale[None, :]
        b_folded = (b * scale + shift).reshape(1, fout)
        # Weight-DMA dominates HBM traffic: keep only the big encoder/decoder
        # matrices in bf16 (MXU-native on v5e/v6e/v7x with f32 accumulation);
        # small middle layers stay f32 (negligible bytes, exact).
        if w_folded.size >= bf16_min_elems:
            w_folded = w_folded.astype(jnp.bfloat16)
        params.append(dict(w=w_folded, b=b_folded, relu=relu))
    return params


# ------------------------------- reference -----------------------------------
def autoencoder_forward_ref(params, x):
    """Pure-JAX reference mirroring the kernel's bf16/f32 mixed precision."""
    h = x.astype(jnp.float32)
    enc = None
    for i, p in enumerate(params):
        lhs = h if p["w"].dtype == jnp.float32 else h.astype(p["w"].dtype)
        z = jnp.dot(lhs, p["w"], preferred_element_type=jnp.float32) + p["b"]
        if p["relu"]:
            z = jnp.maximum(z, 0.0)
        h = z
        if i == 2:
            enc = h
    return enc, h


# --------------------------------- main --------------------------------------
if __name__ == "__main__":
    input_size = 1024      # -> h1 = 128, h2 = 32
    encoding_size = 16
    batch = 8

    root = jax.random.PRNGKey(0)
    k_params, k_x = jax.random.split(root)

    params = make_autoencoder_params(k_params, input_size, encoding_size)
    x = jax.random.normal(k_x, (batch, input_size), jnp.float32)

    encoded, decoded = autoencoder_forward(params, x)
    encoded = jax.block_until_ready(encoded)
    decoded = jax.block_until_ready(decoded)

    enc_ref, dec_ref = autoencoder_forward_ref(params, x)
    np.testing.assert_allclose(np.asarray(encoded), np.asarray(enc_ref),
                               rtol=1e-3, atol=1e-3)
    np.testing.assert_allclose(np.asarray(decoded), np.asarray(dec_ref),
                               rtol=1e-3, atol=1e-3)

    assert encoded.shape == (batch, encoding_size)
    assert decoded.shape == (batch, input_size)
    print("KERNEL_OK")
</pallas_src>

<mosaic_0001>
module attributes {stable_mosaic.version = 11 : i64} {
  func.func @_autoencoder_kernel(%arg0: i32, %arg1: memref<8x1024xf32, #tpu.memory_space<vmem>>, %arg2: memref<1024x128xbf16, #tpu.memory_space<vmem>>, %arg3: memref<1x128xf32, #tpu.memory_space<vmem>>, %arg4: memref<128x32xf32, #tpu.memory_space<vmem>>, %arg5: memref<1x32xf32, #tpu.memory_space<vmem>>, %arg6: memref<32x16xf32, #tpu.memory_space<vmem>>, %arg7: memref<1x16xf32, #tpu.memory_space<vmem>>, %arg8: memref<16x32xf32, #tpu.memory_space<vmem>>, %arg9: memref<1x32xf32, #tpu.memory_space<vmem>>, %arg10: memref<32x128xf32, #tpu.memory_space<vmem>>, %arg11: memref<1x128xf32, #tpu.memory_space<vmem>>, %arg12: memref<128x1024xbf16, #tpu.memory_space<vmem>>, %arg13: memref<1x1024xf32, #tpu.memory_space<vmem>>, %arg14: memref<8x16xf32, #tpu.memory_space<vmem>>, %arg15: memref<8x1024xf32, #tpu.memory_space<vmem>>) attributes {dimension_semantics = [#tpu.dimension_semantics<parallel>], iteration_bounds = array<i64: 1>, scalar_prefetch = 0 : i64, scratch_operands = 0 : i64, tpu.core_type = #tpu.core_type<tc>, window_params = [{transform_indices = @transform_0, window_bounds = array<i64: 8, 1024>}, {pipeline_mode = #tpu.pipeline_mode<synchronous>, transform_indices = @transform_1, window_bounds = array<i64: 1024, 128>}, {pipeline_mode = #tpu.pipeline_mode<synchronous>, transform_indices = @transform_2, window_bounds = array<i64: 1, 128>}, {pipeline_mode = #tpu.pipeline_mode<synchronous>, transform_indices = @transform_3, window_bounds = array<i64: 128, 32>}, {pipeline_mode = #tpu.pipeline_mode<synchronous>, transform_indices = @transform_4, window_bounds = array<i64: 1, 32>}, {pipeline_mode = #tpu.pipeline_mode<synchronous>, transform_indices = @transform_5, window_bounds = array<i64: 32, 16>}, {pipeline_mode = #tpu.pipeline_mode<synchronous>, transform_indices = @transform_6, window_bounds = array<i64: 1, 16>}, {pipeline_mode = #tpu.pipeline_mode<synchronous>, transform_indices = @transform_7, window_bounds = array<i64: 16, 32>}, {pipeline_mode = #tpu.pipeline_mode<synchronous>, transform_indices = @transform_8, window_bounds = array<i64: 1, 32>}, {pipeline_mode = #tpu.pipeline_mode<synchronous>, transform_indices = @transform_9, window_bounds = array<i64: 32, 128>}, {pipeline_mode = #tpu.pipeline_mode<synchronous>, transform_indices = @transform_10, window_bounds = array<i64: 1, 128>}, {pipeline_mode = #tpu.pipeline_mode<synchronous>, transform_indices = @transform_11, window_bounds = array<i64: 128, 1024>}, {pipeline_mode = #tpu.pipeline_mode<synchronous>, transform_indices = @transform_12, window_bounds = array<i64: 1, 1024>}, {transform_indices = @transform_13, window_bounds = array<i64: 8, 16>}, {transform_indices = @transform_14, window_bounds = array<i64: 8, 1024>}]} {
    %c0 = arith.constant 0 : index
    %c0_0 = arith.constant 0 : index
    %0 = vector.load %arg1[%c0, %c0_0] : memref<8x1024xf32, #tpu.memory_space<vmem>>, vector<8x1024xf32>
    %1 = arith.truncf %0 : vector<8x1024xf32> to vector<8x1024xbf16>
    %c0_1 = arith.constant 0 : index
    %c0_2 = arith.constant 0 : index
    %2 = vector.load %arg2[%c0_1, %c0_2] : memref<1024x128xbf16, #tpu.memory_space<vmem>>, vector<1024x128xbf16>
    %cst = arith.constant dense<0.000000e+00> : vector<8x128xf32>
    %3 = tpu.matmul %1, %2, %cst {dimension_numbers = #tpu.dot_dimension_numbers<[1], [0], [0], [1], [0, 0, 1, 1], [], []>} : vector<8x1024xbf16>, vector<1024x128xbf16>, vector<8x128xf32> -> vector<8x128xf32>
    %c0_3 = arith.constant 0 : index
    %c0_4 = arith.constant 0 : index
    %4 = vector.load %arg3[%c0_3, %c0_4] : memref<1x128xf32, #tpu.memory_space<vmem>>, vector<1x128xf32>
    %5 = vector.broadcast %4 : vector<1x128xf32> to vector<8x128xf32>
    %6 = arith.addf %3, %5 : vector<8x128xf32>
    %cst_5 = arith.constant 0.000000e+00 : f32
    %7 = vector.broadcast %cst_5 : f32 to vector<8x128xf32>
    %8 = arith.maximumf %6, %7 : vector<8x128xf32>
    %c0_6 = arith.constant 0 : index
    %c0_7 = arith.constant 0 : index
    %9 = vector.load %arg4[%c0_6, %c0_7] : memref<128x32xf32, #tpu.memory_space<vmem>>, vector<128x32xf32>
    %cst_8 = arith.constant dense<0.000000e+00> : vector<8x32xf32>
    %10 = tpu.matmul %8, %9, %cst_8 {dimension_numbers = #tpu.dot_dimension_numbers<[1], [0], [0], [1], [0, 0, 1, 1], [], []>} : vector<8x128xf32>, vector<128x32xf32>, vector<8x32xf32> -> vector<8x32xf32>
    %c0_9 = arith.constant 0 : index
    %c0_10 = arith.constant 0 : index
    %11 = vector.load %arg5[%c0_9, %c0_10] : memref<1x32xf32, #tpu.memory_space<vmem>>, vector<1x32xf32>
    %12 = vector.broadcast %11 : vector<1x32xf32> to vector<8x32xf32>
    %13 = arith.addf %10, %12 : vector<8x32xf32>
    %cst_11 = arith.constant 0.000000e+00 : f32
    %14 = vector.broadcast %cst_11 : f32 to vector<8x32xf32>
    %15 = arith.maximumf %13, %14 : vector<8x32xf32>
    %c0_12 = arith.constant 0 : index
    %c0_13 = arith.constant 0 : index
    %16 = vector.load %arg6[%c0_12, %c0_13] : memref<32x16xf32, #tpu.memory_space<vmem>>, vector<32x16xf32>
    %cst_14 = arith.constant dense<0.000000e+00> : vector<8x16xf32>
    %17 = tpu.matmul %15, %16, %cst_14 {dimension_numbers = #tpu.dot_dimension_numbers<[1], [0], [0], [1], [0, 0, 1, 1], [], []>} : vector<8x32xf32>, vector<32x16xf32>, vector<8x16xf32> -> vector<8x16xf32>
    %c0_15 = arith.constant 0 : index
    %c0_16 = arith.constant 0 : index
    %18 = vector.load %arg7[%c0_15, %c0_16] : memref<1x16xf32, #tpu.memory_space<vmem>>, vector<1x16xf32>
    %19 = vector.broadcast %18 : vector<1x16xf32> to vector<8x16xf32>
    %20 = arith.addf %17, %19 : vector<8x16xf32>
    %c0_17 = arith.constant 0 : index
    %c0_18 = arith.constant 0 : index
    %21 = vector.load %arg14[%c0_17, %c0_18] : memref<8x16xf32, #tpu.memory_space<vmem>>, vector<8x16xf32>
    tpu.vector_store %arg14[%c0_17, %c0_18], %20 {strides = array<i32>} : memref<8x16xf32, #tpu.memory_space<vmem>>, vector<8x16xf32>,
    %c0_19 = arith.constant 0 : index
    %c0_20 = arith.constant 0 : index
    %22 = vector.load %arg8[%c0_19, %c0_20] : memref<16x32xf32, #tpu.memory_space<vmem>>, vector<16x32xf32>
    %cst_21 = arith.constant dense<0.000000e+00> : vector<8x32xf32>
    %23 = tpu.matmul %20, %22, %cst_21 {dimension_numbers = #tpu.dot_dimension_numbers<[1], [0], [0], [1], [0, 0, 1, 1], [], []>} : vector<8x16xf32>, vector<16x32xf32>, vector<8x32xf32> -> vector<8x32xf32>
    %c0_22 = arith.constant 0 : index
    %c0_23 = arith.constant 0 : index
    %24 = vector.load %arg9[%c0_22, %c0_23] : memref<1x32xf32, #tpu.memory_space<vmem>>, vector<1x32xf32>
    %25 = vector.broadcast %24 : vector<1x32xf32> to vector<8x32xf32>
    %26 = arith.addf %23, %25 : vector<8x32xf32>
    %cst_24 = arith.constant 0.000000e+00 : f32
    %27 = vector.broadcast %cst_24 : f32 to vector<8x32xf32>
    %28 = arith.maximumf %26, %27 : vector<8x32xf32>
    %c0_25 = arith.constant 0 : index
    %c0_26 = arith.constant 0 : index
    %29 = vector.load %arg10[%c0_25, %c0_26] : memref<32x128xf32, #tpu.memory_space<vmem>>, vector<32x128xf32>
    %cst_27 = arith.constant dense<0.000000e+00> : vector<8x128xf32>
    %30 = tpu.matmul %28, %29, %cst_27 {dimension_numbers = #tpu.dot_dimension_numbers<[1], [0], [0], [1], [0, 0, 1, 1], [], []>} : vector<8x32xf32>, vector<32x128xf32>, vector<8x128xf32> -> vector<8x128xf32>
    %c0_28 = arith.constant 0 : index
    %c0_29 = arith.constant 0 : index
    %31 = vector.load %arg11[%c0_28, %c0_29] : memref<1x128xf32, #tpu.memory_space<vmem>>, vector<1x128xf32>
    %32 = vector.broadcast %31 : vector<1x128xf32> to vector<8x128xf32>
    %33 = arith.addf %30, %32 : vector<8x128xf32>
    %cst_30 = arith.constant 0.000000e+00 : f32
    %34 = vector.broadcast %cst_30 : f32 to vector<8x128xf32>
    %35 = arith.maximumf %33, %34 : vector<8x128xf32>
    %36 = arith.truncf %35 : vector<8x128xf32> to vector<8x128xbf16>
    %c0_31 = arith.constant 0 : index
    %c0_32 = arith.constant 0 : index
    %37 = vector.load %arg12[%c0_31, %c0_32] : memref<128x1024xbf16, #tpu.memory_space<vmem>>, vector<128x1024xbf16>
    %cst_33 = arith.constant dense<0.000000e+00> : vector<8x1024xf32>
    %38 = tpu.matmul %36, %37, %cst_33 {dimension_numbers = #tpu.dot_dimension_numbers<[1], [0], [0], [1], [0, 0, 1, 1], [], []>} : vector<8x128xbf16>, vector<128x1024xbf16>, vector<8x1024xf32> -> vector<8x1024xf32>
    %c0_34 = arith.constant 0 : index
    %c0_35 = arith.constant 0 : index
    %39 = vector.load %arg13[%c0_34, %c0_35] : memref<1x1024xf32, #tpu.memory_space<vmem>>, vector<1x1024xf32>
    %40 = vector.broadcast %39 : vector<1x1024xf32> to vector<8x1024xf32>
    %41 = arith.addf %38, %40 : vector<8x1024xf32>
    %c0_36 = arith.constant 0 : index
    %c0_37 = arith.constant 0 : index
    %42 = vector.load %arg15[%c0_36, %c0_37] : memref<8x1024xf32, #tpu.memory_space<vmem>>, vector<8x1024xf32>
    tpu.vector_store %arg15[%c0_36, %c0_37], %41 {strides = array<i32>} : memref<8x1024xf32, #tpu.memory_space<vmem>>, vector<8x1024xf32>,
    return
  }
  func.func @transform_0(%arg0: i32) -> (i32, i32) {
    %c0_i32 = arith.constant 0 : i32
    %c0_i32_0 = arith.constant 0 : i32
    return %arg0, %c0_i32 : i32, i32
  }
  func.func @transform_1(%arg0: i32) -> (i32, i32) {
    %c0_i32 = arith.constant 0 : i32
    %c0_i32_0 = arith.constant 0 : i32
    %c0_i32_1 = arith.constant 0 : i32
    return %c0_i32, %c0_i32_0 : i32, i32
  }
  func.func @transform_2(%arg0: i32) -> (i32, i32) {
    %c0_i32 = arith.constant 0 : i32
    %c0_i32_0 = arith.constant 0 : i32
    %c0_i32_1 = arith.constant 0 : i32
    return %c0_i32, %c0_i32_0 : i32, i32
  }
  func.func @transform_3(%arg0: i32) -> (i32, i32) {
    %c0_i32 = arith.constant 0 : i32
    %c0_i32_0 = arith.constant 0 : i32
    %c0_i32_1 = arith.constant 0 : i32
    return %c0_i32, %c0_i32_0 : i32, i32
  }
  func.func @transform_4(%arg0: i32) -> (i32, i32) {
    %c0_i32 = arith.constant 0 : i32
    %c0_i32_0 = arith.constant 0 : i32
    %c0_i32_1 = arith.constant 0 : i32
    return %c0_i32, %c0_i32_0 : i32, i32
  }
  func.func @transform_5(%arg0: i32) -> (i32, i32) {
    %c0_i32 = arith.constant 0 : i32
    %c0_i32_0 = arith.constant 0 : i32
    %c0_i32_1 = arith.constant 0 : i32
    return %c0_i32, %c0_i32_0 : i32, i32
  }
  func.func @transform_6(%arg0: i32) -> (i32, i32) {
    %c0_i32 = arith.constant 0 : i32
    %c0_i32_0 = arith.constant 0 : i32
    %c0_i32_1 = arith.constant 0 : i32
    return %c0_i32, %c0_i32_0 : i32, i32
  }
  func.func @transform_7(%arg0: i32) -> (i32, i32) {
    %c0_i32 = arith.constant 0 : i32
    %c0_i32_0 = arith.constant 0 : i32
    %c0_i32_1 = arith.constant 0 : i32
    return %c0_i32, %c0_i32_0 : i32, i32
  }
  func.func @transform_8(%arg0: i32) -> (i32, i32) {
    %c0_i32 = arith.constant 0 : i32
    %c0_i32_0 = arith.constant 0 : i32
    %c0_i32_1 = arith.constant 0 : i32
    return %c0_i32, %c0_i32_0 : i32, i32
  }
  func.func @transform_9(%arg0: i32) -> (i32, i32) {
    %c0_i32 = arith.constant 0 : i32
    %c0_i32_0 = arith.constant 0 : i32
    %c0_i32_1 = arith.constant 0 : i32
    return %c0_i32, %c0_i32_0 : i32, i32
  }
  func.func @transform_10(%arg0: i32) -> (i32, i32) {
    %c0_i32 = arith.constant 0 : i32
    %c0_i32_0 = arith.constant 0 : i32
    %c0_i32_1 = arith.constant 0 : i32
    return %c0_i32, %c0_i32_0 : i32, i32
  }
  func.func @transform_11(%arg0: i32) -> (i32, i32) {
    %c0_i32 = arith.constant 0 : i32
    %c0_i32_0 = arith.constant 0 : i32
    %c0_i32_1 = arith.constant 0 : i32
    return %c0_i32, %c0_i32_0 : i32, i32
  }
  func.func @transform_12(%arg0: i32) -> (i32, i32) {
    %c0_i32 = arith.constant 0 : i32
    %c0_i32_0 = arith.constant 0 : i32
    %c0_i32_1 = arith.constant 0 : i32
    return %c0_i32, %c0_i32_0 : i32, i32
  }
  func.func @transform_13(%arg0: i32) -> (i32, i32) {
    %c0_i32 = arith.constant 0 : i32
    %c0_i32_0 = arith.constant 0 : i32
    return %arg0, %c0_i32 : i32, i32
  }
  func.func @transform_14(%arg0: i32) -> (i32, i32) {
    %c0_i32 = arith.constant 0 : i32
    %c0_i32_0 = arith.constant 0 : i32
    return %arg0, %c0_i32 : i32, i32
  }
}

module attributes {stable_mosaic.version = 11 : i64} {
  func.func @_autoencoder_kernel(%arg0: i32, %arg1: memref<8x1024xf32, #tpu.memory_space<vmem>>, %arg2: memref<1024x128xbf16, #tpu.memory_space<vmem>>, %arg3: memref<1x128xf32, #tpu.memory_space<vmem>>, %arg4: memref<128x32xf32, #tpu.memory_space<vmem>>, %arg5: memref<1x32xf32, #tpu.memory_space<vmem>>, %arg6: memref<32x16xf32, #tpu.memory_space<vmem>>, %arg7: memref<1x16xf32, #tpu.memory_space<vmem>>, %arg8: memref<16x32xf32, #tpu.memory_space<vmem>>, %arg9: memref<1x32xf32, #tpu.memory_space<vmem>>, %arg10: memref<32x128xf32, #tpu.memory_space<vmem>>, %arg11: memref<1x128xf32, #tpu.memory_space<vmem>>, %arg12: memref<128x1024xbf16, #tpu.memory_space<vmem>>, %arg13: memref<1x1024xf32, #tpu.memory_space<vmem>>, %arg14: memref<8x16xf32, #tpu.memory_space<vmem>>, %arg15: memref<8x1024xf32, #tpu.memory_space<vmem>>) attributes {dimension_semantics = [#tpu.dimension_semantics<parallel>], iteration_bounds = array<i64: 1>, scalar_prefetch = 0 : i64, scratch_operands = 0 : i64, tpu.core_type = #tpu.core_type<tc>, window_params = [{transform_indices = @transform_0, window_bounds = array<i64: 8, 1024>}, {pipeline_mode = #tpu.pipeline_mode<synchronous>, transform_indices = @transform_1, window_bounds = array<i64: 1024, 128>}, {pipeline_mode = #tpu.pipeline_mode<synchronous>, transform_indices = @transform_2, window_bounds = array<i64: 1, 128>}, {pipeline_mode = #tpu.pipeline_mode<synchronous>, transform_indices = @transform_3, window_bounds = array<i64: 128, 32>}, {pipeline_mode = #tpu.pipeline_mode<synchronous>, transform_indices = @transform_4, window_bounds = array<i64: 1, 32>}, {pipeline_mode = #tpu.pipeline_mode<synchronous>, transform_indices = @transform_5, window_bounds = array<i64: 32, 16>}, {pipeline_mode = #tpu.pipeline_mode<synchronous>, transform_indices = @transform_6, window_bounds = array<i64: 1, 16>}, {pipeline_mode = #tpu.pipeline_mode<synchronous>, transform_indices = @transform_7, window_bounds = array<i64: 16, 32>}, {pipeline_mode = #tpu.pipeline_mode<synchronous>, transform_indices = @transform_8, window_bounds = array<i64: 1, 32>}, {pipeline_mode = #tpu.pipeline_mode<synchronous>, transform_indices = @transform_9, window_bounds = array<i64: 32, 128>}, {pipeline_mode = #tpu.pipeline_mode<synchronous>, transform_indices = @transform_10, window_bounds = array<i64: 1, 128>}, {pipeline_mode = #tpu.pipeline_mode<synchronous>, transform_indices = @transform_11, window_bounds = array<i64: 128, 1024>}, {pipeline_mode = #tpu.pipeline_mode<synchronous>, transform_indices = @transform_12, window_bounds = array<i64: 1, 1024>}, {transform_indices = @transform_13, window_bounds = array<i64: 8, 16>}, {transform_indices = @transform_14, window_bounds = array<i64: 8, 1024>}]} {
    %c0 = arith.constant 0 : index
    %c0_0 = arith.constant 0 : index
    %0 = vector.load %arg1[%c0, %c0_0] : memref<8x1024xf32, #tpu.memory_space<vmem>>, vector<8x1024xf32>
    %1 = arith.truncf %0 : vector<8x1024xf32> to vector<8x1024xbf16>
    %c0_1 = arith.constant 0 : index
    %c0_2 = arith.constant 0 : index
    %2 = vector.load %arg2[%c0_1, %c0_2] : memref<1024x128xbf16, #tpu.memory_space<vmem>>, vector<1024x128xbf16>
    %cst = arith.constant dense<0.000000e+00> : vector<8x128xf32>
    %3 = tpu.matmul %1, %2, %cst {dimension_numbers = #tpu.dot_dimension_numbers<[1], [0], [0], [1], [0, 0, 1, 1], [], []>} : vector<8x1024xbf16>, vector<1024x128xbf16>, vector<8x128xf32> -> vector<8x128xf32>
    %c0_3 = arith.constant 0 : index
    %c0_4 = arith.constant 0 : index
    %4 = vector.load %arg3[%c0_3, %c0_4] : memref<1x128xf32, #tpu.memory_space<vmem>>, vector<1x128xf32>
    %5 = vector.broadcast %4 : vector<1x128xf32> to vector<8x128xf32>
    %6 = arith.addf %3, %5 : vector<8x128xf32>
    %cst_5 = arith.constant 0.000000e+00 : f32
    %7 = vector.broadcast %cst_5 : f32 to vector<8x128xf32>
    %8 = arith.maximumf %6, %7 : vector<8x128xf32>
    %c0_6 = arith.constant 0 : index
    %c0_7 = arith.constant 0 : index
    %9 = vector.load %arg4[%c0_6, %c0_7] : memref<128x32xf32, #tpu.memory_space<vmem>>, vector<128x32xf32>
    %cst_8 = arith.constant dense<0.000000e+00> : vector<8x32xf32>
    %10 = tpu.matmul %8, %9, %cst_8 {dimension_numbers = #tpu.dot_dimension_numbers<[1], [0], [0], [1], [0, 0, 1, 1], [], []>} : vector<8x128xf32>, vector<128x32xf32>, vector<8x32xf32> -> vector<8x32xf32>
    %c0_9 = arith.constant 0 : index
    %c0_10 = arith.constant 0 : index
    %11 = vector.load %arg5[%c0_9, %c0_10] : memref<1x32xf32, #tpu.memory_space<vmem>>, vector<1x32xf32>
    %12 = vector.broadcast %11 : vector<1x32xf32> to vector<8x32xf32>
    %13 = arith.addf %10, %12 : vector<8x32xf32>
    %cst_11 = arith.constant 0.000000e+00 : f32
    %14 = vector.broadcast %cst_11 : f32 to vector<8x32xf32>
    %15 = arith.maximumf %13, %14 : vector<8x32xf32>
    %c0_12 = arith.constant 0 : index
    %c0_13 = arith.constant 0 : index
    %16 = vector.load %arg6[%c0_12, %c0_13] : memref<32x16xf32, #tpu.memory_space<vmem>>, vector<32x16xf32>
    %cst_14 = arith.constant dense<0.000000e+00> : vector<8x16xf32>
    %17 = tpu.matmul %15, %16, %cst_14 {dimension_numbers = #tpu.dot_dimension_numbers<[1], [0], [0], [1], [0, 0, 1, 1], [], []>} : vector<8x32xf32>, vector<32x16xf32>, vector<8x16xf32> -> vector<8x16xf32>
    %c0_15 = arith.constant 0 : index
    %c0_16 = arith.constant 0 : index
    %18 = vector.load %arg7[%c0_15, %c0_16] : memref<1x16xf32, #tpu.memory_space<vmem>>, vector<1x16xf32>
    %19 = vector.broadcast %18 : vector<1x16xf32> to vector<8x16xf32>
    %20 = arith.addf %17, %19 : vector<8x16xf32>
    %c0_17 = arith.constant 0 : index
    %c0_18 = arith.constant 0 : index
    %21 = vector.load %arg14[%c0_17, %c0_18] : memref<8x16xf32, #tpu.memory_space<vmem>>, vector<8x16xf32>
    tpu.vector_store %arg14[%c0_17, %c0_18], %20 {strides = array<i32>} : memref<8x16xf32, #tpu.memory_space<vmem>>, vector<8x16xf32>,
    %c0_19 = arith.constant 0 : index
    %c0_20 = arith.constant 0 : index
    %22 = vector.load %arg8[%c0_19, %c0_20] : memref<16x32xf32, #tpu.memory_space<vmem>>, vector<16x32xf32>
    %cst_21 = arith.constant dense<0.000000e+00> : vector<8x32xf32>
    %23 = tpu.matmul %20, %22, %cst_21 {dimension_numbers = #tpu.dot_dimension_numbers<[1], [0], [0], [1], [0, 0, 1, 1], [], []>} : vector<8x16xf32>, vector<16x32xf32>, vector<8x32xf32> -> vector<8x32xf32>
    %c0_22 = arith.constant 0 : index
    %c0_23 = arith.constant 0 : index
    %24 = vector.load %arg9[%c0_22, %c0_23] : memref<1x32xf32, #tpu.memory_space<vmem>>, vector<1x32xf32>
    %25 = vector.broadcast %24 : vector<1x32xf32> to vector<8x32xf32>
    %26 = arith.addf %23, %25 : vector<8x32xf32>
    %cst_24 = arith.constant 0.000000e+00 : f32
    %27 = vector.broadcast %cst_24 : f32 to vector<8x32xf32>
    %28 = arith.maximumf %26, %27 : vector<8x32xf32>
    %c0_25 = arith.constant 0 : index
    %c0_26 = arith.constant 0 : index
    %29 = vector.load %arg10[%c0_25, %c0_26] : memref<32x128xf32, #tpu.memory_space<vmem>>, vector<32x128xf32>
    %cst_27 = arith.constant dense<0.000000e+00> : vector<8x128xf32>
    %30 = tpu.matmul %28, %29, %cst_27 {dimension_numbers = #tpu.dot_dimension_numbers<[1], [0], [0], [1], [0, 0, 1, 1], [], []>} : vector<8x32xf32>, vector<32x128xf32>, vector<8x128xf32> -> vector<8x128xf32>
    %c0_28 = arith.constant 0 : index
    %c0_29 = arith.constant 0 : index
    %31 = vector.load %arg11[%c0_28, %c0_29] : memref<1x128xf32, #tpu.memory_space<vmem>>, vector<1x128xf32>
    %32 = vector.broadcast %31 : vector<1x128xf32> to vector<8x128xf32>
    %33 = arith.addf %30, %32 : vector<8x128xf32>
    %cst_30 = arith.constant 0.000000e+00 : f32
    %34 = vector.broadcast %cst_30 : f32 to vector<8x128xf32>
    %35 = arith.maximumf %33, %34 : vector<8x128xf32>
    %36 = arith.truncf %35 : vector<8x128xf32> to vector<8x128xbf16>
    %c0_31 = arith.constant 0 : index
    %c0_32 = arith.constant 0 : index
    %37 = vector.load %arg12[%c0_31, %c0_32] : memref<128x1024xbf16, #tpu.memory_space<vmem>>, vector<128x1024xbf16>
    %cst_33 = arith.constant dense<0.000000e+00> : vector<8x1024xf32>
    %38 = tpu.matmul %36, %37, %cst_33 {dimension_numbers = #tpu.dot_dimension_numbers<[1], [0], [0], [1], [0, 0, 1, 1], [], []>} : vector<8x128xbf16>, vector<128x1024xbf16>, vector<8x1024xf32> -> vector<8x1024xf32>
    %c0_34 = arith.constant 0 : index
    %c0_35 = arith.constant 0 : index
    %39 = vector.load %arg13[%c0_34, %c0_35] : memref<1x1024xf32, #tpu.memory_space<vmem>>, vector<1x1024xf32>
    %40 = vector.broadcast %39 : vector<1x1024xf32> to vector<8x1024xf32>
    %41 = arith.addf %38, %40 : vector<8x1024xf32>
    %c0_36 = arith.constant 0 : index
    %c0_37 = arith.constant 0 : index
    %42 = vector.load %arg15[%c0_36, %c0_37] : memref<8x1024xf32, #tpu.memory_space<vmem>>, vector<8x1024xf32>
    tpu.vector_store %arg15[%c0_36, %c0_37], %41 {strides = array<i32>} : memref<8x1024xf32, #tpu.memory_space<vmem>>, vector<8x1024xf32>,
    return
  }
  func.func @transform_0(%arg0: i32) -> (i32, i32) {
    %c0_i32 = arith.constant 0 : i32
    %c0_i32_0 = arith.constant 0 : i32
    return %arg0, %c0_i32 : i32, i32
  }
  func.func @transform_1(%arg0: i32) -> (i32, i32) {
    %c0_i32 = arith.constant 0 : i32
    %c0_i32_0 = arith.constant 0 : i32
    %c0_i32_1 = arith.constant 0 : i32
    return %c0_i32, %c0_i32_0 : i32, i32
  }
  func.func @transform_2(%arg0: i32) -> (i32, i32) {
    %c0_i32 = arith.constant 0 : i32
    %c0_i32_0 = arith.constant 0 : i32
    %c0_i32_1 = arith.constant 0 : i32
    return %c0_i32, %c0_i32_0 : i32, i32
  }
  func.func @transform_3(%arg0: i32) -> (i32, i32) {
    %c0_i32 = arith.constant 0 : i32
    %c0_i32_0 = arith.constant 0 : i32
    %c0_i32_1 = arith.constant 0 : i32
    return %c0_i32, %c0_i32_0 : i32, i32
  }
  func.func @transform_4(%arg0: i32) -> (i32, i32) {
    %c0_i32 = arith.constant 0 : i32
    %c0_i32_0 = arith.constant 0 : i32
    %c0_i32_1 = arith.constant 0 : i32
    return %c0_i32, %c0_i32_0 : i32, i32
  }
  func.func @transform_5(%arg0: i32) -> (i32, i32) {
    %c0_i32 = arith.constant 0 : i32
    %c0_i32_0 = arith.constant 0 : i32
    %c0_i32_1 = arith.constant 0 : i32
    return %c0_i32, %c0_i32_0 : i32, i32
  }
  func.func @transform_6(%arg0: i32) -> (i32, i32) {
    %c0_i32 = arith.constant 0 : i32
    %c0_i32_0 = arith.constant 0 : i32
    %c0_i32_1 = arith.constant 0 : i32
    return %c0_i32, %c0_i32_0 : i32, i32
  }
  func.func @transform_7(%arg0: i32) -> (i32, i32) {
    %c0_i32 = arith.constant 0 : i32
    %c0_i32_0 = arith.constant 0 : i32
    %c0_i32_1 = arith.constant 0 : i32
    return %c0_i32, %c0_i32_0 : i32, i32
  }
  func.func @transform_8(%arg0: i32) -> (i32, i32) {
    %c0_i32 = arith.constant 0 : i32
    %c0_i32_0 = arith.constant 0 : i32
    %c0_i32_1 = arith.constant 0 : i32
    return %c0_i32, %c0_i32_0 : i32, i32
  }
  func.func @transform_9(%arg0: i32) -> (i32, i32) {
    %c0_i32 = arith.constant 0 : i32
    %c0_i32_0 = arith.constant 0 : i32
    %c0_i32_1 = arith.constant 0 : i32
    return %c0_i32, %c0_i32_0 : i32, i32
  }
  func.func @transform_10(%arg0: i32) -> (i32, i32) {
    %c0_i32 = arith.constant 0 : i32
    %c0_i32_0 = arith.constant 0 : i32
    %c0_i32_1 = arith.constant 0 : i32
    return %c0_i32, %c0_i32_0 : i32, i32
  }
  func.func @transform_11(%arg0: i32) -> (i32, i32) {
    %c0_i32 = arith.constant 0 : i32
    %c0_i32_0 = arith.constant 0 : i32
    %c0_i32_1 = arith.constant 0 : i32
    return %c0_i32, %c0_i32_0 : i32, i32
  }
  func.func @transform_12(%arg0: i32) -> (i32, i32) {
    %c0_i32 = arith.constant 0 : i32
    %c0_i32_0 = arith.constant 0 : i32
    %c0_i32_1 = arith.constant 0 : i32
    return %c0_i32, %c0_i32_0 : i32, i32
  }
  func.func @transform_13(%arg0: i32) -> (i32, i32) {
    %c0_i32 = arith.constant 0 : i32
    %c0_i32_0 = arith.constant 0 : i32
    return %arg0, %c0_i32 : i32, i32
  }
  func.func @transform_14(%arg0: i32) -> (i32, i32) {
    %c0_i32 = arith.constant 0 : i32
    %c0_i32_0 = arith.constant 0 : i32
    return %arg0, %c0_i32 : i32, i32
  }
}

</mosaic_0001>

<bundles_post_ra>
// kernel: tpu_custom_call.1
= control target key start
LH: loop header
LB: loop body
LE: loop exit
PB: predicated region body
PF: predicated region fallthrough
CT: control target
= control target key end

     0   :  { %20 = vsyncpa [#allocation3], 0  ;;  %s2564_s0 = inlined_call_operand.vmem [shape: f32[8,1024], index: 0, kind: input, shape index: {}]   ;;  %s2565_s1 = inlined_call_operand.hbm [shape: bf16[1024,128], index: 1, kind: input, shape index: {}]   ;;  %s2566_s2 = inlined_call_operand.vmem [shape: f32[1,128], index: 2, kind: input, shape index: {}]   ;;  %s2567_s3 = inlined_call_operand.vmem [shape: f32[128,32], index: 3, kind: input, shape index: {}]   ;;  %s2568_s4 = inlined_call_operand.vmem [shape: f32[1,32], index: 4, kind: input, shape index: {}]   ;;  %s2569_s5 = inlined_call_operand.vmem [shape: f32[32,16], index: 5, kind: input, shape index: {}]   ;;  %s2570_s6 = inlined_call_operand.vmem [shape: f32[1,16], index: 6, kind: input, shape index: {}]   ;;  %s2571_s7 = inlined_call_operand.vmem [shape: f32[16,32], index: 7, kind: input, shape index: {}]   ;;  %s2572_s8 = inlined_call_operand.vmem [shape: f32[1,32], index: 8, kind: input, shape index: {}]   ;;  %s2573_s9 = inlined_call_operand.vmem [shape: f32[32,128], index: 9, kind: input, shape index: {}]   ;;  %s2574_s10 = inlined_call_operand.vmem [shape: f32[1,128], index: 10, kind: input, shape index: {}]   ;;  %s2575_s11 = inlined_call_operand.hbm [shape: bf16[128,1024], index: 11, kind: input, shape index: {}]   ;;  %s2576_s12 = inlined_call_operand.vmem [shape: f32[1,1024], index: 12, kind: input, shape index: {}]   ;;  %s2577_s13 = inlined_call_operand.hbm [shape: f32[8,16], index: 13, kind: output, shape index: {0}]   ;;  %s2578_s14 = inlined_call_operand.hbm [shape: f32[8,1024], index: 14, kind: output, shape index: {1}]  }
   0x1   :  { %21 = vsyncpa [#allocation6], 0 }
   0x2   :  { %22 = vsyncpa [#allocation4], 0 }
   0x3   :  { %23 = vsyncpa [#allocation9], 0  ;;  %s2280_s29 = smov [#allocation2]   ;;  %s2184_s17 = scalar_lea.hbm %s2565_s1, 8192 }
   0x4   :  { %s31_s30 = sshll.u32 %s2280_s29, 4  ;;  %p2185_p0 = scmp.ne.s32.totalorder %s2565_s1, %s2184_s17  ;;  %s32_s30 = int_to_ptr.vmem [resolvable:$true] %s31_s30 }
   0x5   :  { %p2188_p1 = scmp.lt.u32.totalorder %s2184_s17, %s2565_s1 }
   0x7   :  { %p2190_p2 = pnand %p2188_p1, %p2185_p0 }
   0x9   :  { %2193 = shalt.err (!%p2190_p2)
}
   0xa   :  { %s2194_s22 = scalar_lea.vmem %s32_s30, 8192  ;;  %p2199_p4 = scmp.lt.s32.totalorder %s32_s30, %s32_s30 }
   0xb   :  { %p2195_p3 = scmp.ne.s32.totalorder %s32_s30, %s2194_s22  ;;  %p2200_p5 = scmp.lt.s32.totalorder %s2194_s22, %s2194_s22 }
   0xd   :  { %p2201_p6 = por %p2200_p5, %p2199_p4 }
   0xf   :  { %p2202_p7 = pnand %p2201_p6, %p2195_p3 }
  0x11   :  { %2205 = shalt.err (!%p2202_p7)
}
  0x12   :  { %s2281_s23 = smov 64   ;;  %s2282_s24 = smov 4  }
  0x13   :  { %37 = dma.hbm_to_vmem [thread:$0]  %s2565_s1, 8192, %s32_s30, [#allocation3], %s2281_s23, %s2281_s23, %s2282_s24  }
  0x14   :  { %s2283_s27 = smov [#allocation5]   ;;  %s2206_s16 = scalar_lea.hbm %s2575_s11, 8192 }
  0x15   :  { %s61_s28 = sshll.u32 %s2283_s27, 4  ;;  %p2207_p8 = scmp.ne.s32.totalorder %s2575_s11, %s2206_s16  ;;  %s62_s28 = int_to_ptr.vmem [resolvable:$true] %s61_s28 }
  0x16   :  { %p2210_p9 = scmp.lt.u32.totalorder %s2206_s16, %s2575_s11 }
  0x18   :  { %p2212_p10 = pnand %p2210_p9, %p2207_p8 }
  0x1a   :  { %2215 = shalt.err (!%p2212_p10)
}
  0x1b   :  { %s2216_s21 = scalar_lea.vmem %s62_s28, 8192  ;;  %p2221_p12 = scmp.lt.s32.totalorder %s62_s28, %s62_s28 }
  0x1c   :  { %p2217_p11 = scmp.ne.s32.totalorder %s62_s28, %s2216_s21  ;;  %p2222_p13 = scmp.lt.s32.totalorder %s2216_s21, %s2216_s21 }
  0x1e   :  { %p2223_p0 = por %p2222_p13, %p2221_p12 }
  0x20   :  { %p2224_p1 = pnand %p2223_p0, %p2217_p11 }
  0x22   :  { %2227 = shalt.err (!%p2224_p1)
}
  0x23   :  { %s2284_s1 = smov 512   ;;  %s2285_s30 = smov 32  }
  0x24   :  { %67 = dma.hbm_to_vmem [thread:$0]  %s2575_s11, 8192, %s62_s28, [#allocation6], %s2284_s1, %s2284_s1, %s2285_s30  }
  0x25   :  { %2272 = dma.done.wait [#allocation3], 8192  }
  0x26   :  { %2273 = vsyncadd [#allocation3], 4294959104 }
  0x27   :  { %2274 = dma.done.wait [#allocation6], 8192  }
  0x28   :  { %2275 = vsyncadd [#allocation6], 4294959104  ;;  %v2120_v0 = vld [vmem:[#allocation2 + $0x40] sm:$0xff]   ;;  %v2124_v4 = vld [vmem:[#allocation2 + $0x48] sm:$0xff]   ;;  %vm2287_vm0 = vmmov 0   ;;  %vm878_vm1 = vcmask 261120  }
  0x29   :  { %v2121_v1 = vld [vmem:[#allocation2 + $0xc0] sm:$0xff]   ;;  %1887 = vmatprep.subr.bf16.mxu0 %v2120_v0  ;;  %v2125_v5 = vld [vmem:[#allocation2 + $0xc8] sm:$0xff]   ;;  %v2128_v8 = vld [vmem:[#allocation2 + $0x50] sm:$0xff]   ;;  %vm952_vm2 = vcmask 130048  }
  0x2a   :  { %v2122_v2 = vld [vmem:[#allocation2] sm:$0xff]   ;;  %1909 = vmatprep.subr.bf16.mxu1 %v2121_v1  ;;  %v2126_v6 = vld [vmem:[#allocation2 + $0x8] sm:$0xff]   ;;  %v2129_v9 = vld [vmem:[#allocation2 + $0xd0] sm:$0xff]  }
  0x2b   :  { %v2123_v3 = vld [vmem:[#allocation2 + $0x80] sm:$0xff]   ;;  %1888 = vmatpush3.bf16.msra.mxu0 %v2122_v2  ;;  %v2127_v7 = vld [vmem:[#allocation2 + $0x88] sm:$0xff]   ;;  %v2130_v10 = vld [vmem:[#allocation2 + $0x10] sm:$0xff]  }
  0x2c   :  { %1910 = vmatpush3.bf16.msra.mxu1 %v2123_v3  ;;  %1889 = vmatprep.subr.bf16.mxu0 %v2124_v4  ;;  %v2131_v11 = vld [vmem:[#allocation2 + $0x90] sm:$0xff]   ;;  %v2132_v12 = vld [vmem:[#allocation2 + $0x58] sm:$0xff]   ;;  %v2136_v16 = vld [vmem:[#allocation2 + $0x60] sm:$0xff]  }
  0x2d   :  { %1911 = vmatprep.subr.bf16.mxu1 %v2125_v5  ;;  %v2133_v13 = vld [vmem:[#allocation2 + $0xd8] sm:$0xff]   ;;  %v2137_v17 = vld [vmem:[#allocation2 + $0xe0] sm:$0xff]   ;;  %v2140_v20 = vld [vmem:[#allocation2 + $0x68] sm:$0xff]  }
  0x2e   :  { %v2134_v14 = vld [vmem:[#allocation2 + $0x18] sm:$0xff]   ;;  %v2138_v18 = vld [vmem:[#allocation2 + $0x20] sm:$0xff]   ;;  %v2141_v21 = vld [vmem:[#allocation2 + $0xe8] sm:$0xff]  }
  0x2f   :  { %1890 = vmatpush3.bf16.msra.mxu0 %v2126_v6  ;;  %v2135_v15 = vld [vmem:[#allocation2 + $0x98] sm:$0xff]   ;;  %v2139_v19 = vld [vmem:[#allocation2 + $0xa0] sm:$0xff]   ;;  %v2142_v22 = vld [vmem:[#allocation2 + $0x28] sm:$0xff]  }
  0x30   :  { %1912 = vmatpush3.bf16.msra.mxu1 %v2127_v7  ;;  %1891 = vmatprep.subr.bf16.mxu0 %v2128_v8  ;;  %v2143_v23 = vld [vmem:[#allocation2 + $0xa8] sm:$0xff]   ;;  %v2144_v24 = vld [vmem:[#allocation2 + $0x70] sm:$0xff]   ;;  %v2148_v28 = vld [vmem:[#allocation2 + $0x78] sm:$0xff]  }
  0x31   :  { %1913 = vmatprep.subr.bf16.mxu1 %v2129_v9  ;;  %v2145_v25 = vld [vmem:[#allocation2 + $0xf0] sm:$0xff]   ;;  %v2149_v29 = vld [vmem:[#allocation2 + $0xf8] sm:$0xff]   ;;  %v78_v32 = vld [vmem:[%s2564_s0 + $0x8] sm:$0xff] }
  0x32   :  { %v2146_v26 = vld [vmem:[#allocation2 + $0x30] sm:$0xff]   ;;  %v2150_v30 = vld [vmem:[#allocation2 + $0x38] sm:$0xff]   ;;  %v77_v34 = vld [vmem:[%s2564_s0] sm:$0xff]  ;;  %v86_v35 = vpack.c.bf16 %v78_v32, %v78_v32 }
  0x33   :  { %1892 = vmatpush3.bf16.msra.mxu0 %v2130_v10  ;;  %v2147_v27 = vld [vmem:[#allocation2 + $0xb0] sm:$0xff]   ;;  %v2151_v31 = vld [vmem:[#allocation2 + $0xb8] sm:$0xff]   ;;  %v85_v37 = vpack.c.bf16 %v77_v34, %v77_v34  ;;  %v2152_v40 = vld [vmem:[#allocation2 + $0x140] sm:$0xff]  }
  0x34   :  { %1914 = vmatpush3.bf16.msra.mxu1 %v2131_v11  ;;  %1893 = vmatprep.subr.bf16.mxu0 %v2132_v12  ;;  %v80_v33 = vld [vmem:[%s2564_s0 + $0x18] sm:$0xff]  ;;  %v79_v38 = vld [vmem:[%s2564_s0 + $0x10] sm:$0xff]  ;;  %v2153_v41 = vld [vmem:[#allocation2 + $0x1c0] sm:$0xff]  }
  0x35   :  { %1915 = vmatprep.subr.bf16.mxu1 %v2133_v13  ;;  %v88_v36 = vpack.c.bf16 %v80_v33, %v80_v33  ;;  %v87_v39 = vpack.c.bf16 %v79_v38, %v79_v38  ;;  %644 = vmatprep.mubr.bf16.mxu0 %v86_v35  ;;  %v2154_v42 = vld [vmem:[#allocation2 + $0x100] sm:$0xff]   ;;  %v2156_v44 = vld [vmem:[#allocation2 + $0x148] sm:$0xff]   ;;  %v2160_v48 = vld [vmem:[#allocation2 + $0x150] sm:$0xff]  }
  0x36   :  { %v2155_v43 = vld [vmem:[#allocation2 + $0x180] sm:$0xff]   ;;  %v2157_v45 = vld [vmem:[#allocation2 + $0x1c8] sm:$0xff]   ;;  %v2161_v49 = vld [vmem:[#allocation2 + $0x1d0] sm:$0xff]  }
  0x37   :  { %1894 = vmatpush3.bf16.msra.mxu0 %v2134_v14  ;;  %684 = vmatprep.mubr.bf16.mxu1 %v88_v36  ;;  %v2158_v46 = vld [vmem:[#allocation2 + $0x108] sm:$0xff]   ;;  %v2162_v50 = vld [vmem:[#allocation2 + $0x110] sm:$0xff]   ;;  %v2164_v52 = vld [vmem:[#allocation2 + $0x158] sm:$0xff]  }
  0x38   :  { %1916 = vmatpush3.bf16.msra.mxu1 %v2135_v15  ;;  %1895 = vmatprep.subr.bf16.mxu0 %v2136_v16  ;;  %v2159_v47 = vld [vmem:[#allocation2 + $0x188] sm:$0xff]   ;;  %v2163_v51 = vld [vmem:[#allocation2 + $0x190] sm:$0xff]   ;;  %v2165_v53 = vld [vmem:[#allocation2 + $0x1d8] sm:$0xff]  }
  0x39   :  { %1917 = vmatprep.subr.bf16.mxu1 %v2137_v17  ;;  %v2166_v54 = vld [vmem:[#allocation2 + $0x118] sm:$0xff]   ;;  %v2168_v56 = vld [vmem:[#allocation2 + $0x160] sm:$0xff]   ;;  %v2172_v60 = vld [vmem:[#allocation2 + $0x168] sm:$0xff]  }
  0x3a   :  { %v2167_v55 = vld [vmem:[#allocation2 + $0x198] sm:$0xff]   ;;  %v2169_v57 = vld [vmem:[#allocation2 + $0x1e0] sm:$0xff]   ;;  %v2173_v61 = vld [vmem:[#allocation2 + $0x1e8] sm:$0xff]  }
  0x3b   :  { %1896 = vmatpush3.bf16.msra.mxu0 %v2138_v18  ;;  %v2170_v58 = vld [vmem:[#allocation2 + $0x120] sm:$0xff]   ;;  %v2174_v62 = vld [vmem:[#allocation2 + $0x128] sm:$0xff]   ;;  %v2176_v0 = vld [vmem:[#allocation2 + $0x170] sm:$0xff]  }
  0x3c   :  { %1918 = vmatpush3.bf16.msra.mxu1 %v2139_v19  ;;  %1897 = vmatprep.subr.bf16.mxu0 %v2140_v20  ;;  %v2171_v59 = vld [vmem:[#allocation2 + $0x1a0] sm:$0xff]   ;;  %v2175_v63 = vld [vmem:[#allocation2 + $0x1a8] sm:$0xff]   ;;  %v2177_v1 = vld [vmem:[#allocation2 + $0x1f0] sm:$0xff]   ;;  %v2286_v19 = vmov 0.0|0.0  }
  0x3d   :  { %1919 = vmatprep.subr.bf16.mxu1 %v2141_v21  ;;  %v2178_v2 = vld [vmem:[#allocation2 + $0x130] sm:$0xff]   ;;  %v2180_v4 = vld [vmem:[#allocation2 + $0x178] sm:$0xff]   ;;  %v82_v8 = vld [vmem:[%s2564_s0 + $0x28] sm:$0xff] }
  0x3e   :  { %v2179_v3 = vld [vmem:[#allocation2 + $0x1b0] sm:$0xff]   ;;  %v2181_v5 = vld [vmem:[#allocation2 + $0x1f8] sm:$0xff]   ;;  %v90_v10 = vpack.c.bf16 %v82_v8, %v82_v8  ;;  %v81_v12 = vld [vmem:[%s2564_s0 + $0x20] sm:$0xff] }
  0x3f   :  { %1898 = vmatpush3.bf16.msra.mxu0 %v2142_v22  ;;  %v2182_v6 = vld [vmem:[#allocation2 + $0x138] sm:$0xff]   ;;  %v83_v13 = vld [vmem:[%s2564_s0 + $0x30] sm:$0xff]  ;;  %v89_v14 = vpack.c.bf16 %v81_v12, %v81_v12  ;;  %v773_v16 = vld [vmem:[%s2567_s3] sm:$0xff] }
  0x40   :  { %1920 = vmatpush3.bf16.msra.mxu1 %v2143_v23  ;;  %1899 = vmatprep.subr.bf16.mxu0 %v2144_v24  ;;  %v2183_v7 = vld [vmem:[#allocation2 + $0x1b8] sm:$0xff]   ;;  %v91_v15 = vpack.c.bf16 %v83_v13, %v83_v13  ;;  %v774_v17 = vld [vmem:[%s2567_s3 + $0x8] sm:$0xff]  ;;  %v775_v18 = vld [vmem:[%s2567_s3 + $0x10] sm:$0xff] }
  0x41   :  { %1921 = vmatprep.subr.bf16.mxu1 %v2145_v25  ;;  %v84_v9 = vld [vmem:[%s2564_s0 + $0x38] sm:$0xff]  ;;  %v2070_v20 = vpack.c.bf16 %v774_v17, %v773_v16  ;;  %v777_v23 = vld [vmem:[%s2567_s3 + $0x20] sm:$0xff]  ;;  %v778_v24 = vld [vmem:[%s2567_s3 + $0x28] sm:$0xff] }
  0x42   :  { %v92_v11 = vpack.c.bf16 %v84_v9, %v84_v9  ;;  %v776_v21 = vld [vmem:[%s2567_s3 + $0x18] sm:$0xff]  ;;  %v2076_v25 = vpack.c.bf16 %v778_v24, %v777_v23  ;;  %v783_v32 = vld [vmem:[%s2567_s3 + $0x50] sm:$0xff]  ;;  %v785_v35 = vld [vmem:[%s2567_s3 + $0x60] sm:$0xff] }
  0x43   :  { %1900 = vmatpush3.bf16.msra.mxu0 %v2146_v26  ;;  %v2073_v22 = vpack.c.bf16 %v776_v21, %v775_v18  ;;  %v779_v26 = vld [vmem:[%s2567_s3 + $0x30] sm:$0xff]  ;;  %v784_v33 = vld [vmem:[%s2567_s3 + $0x58] sm:$0xff]  ;;  %v786_v36 = vld [vmem:[%s2567_s3 + $0x68] sm:$0xff] }
  0x44   :  { %1922 = vmatpush3.bf16.msra.mxu1 %v2147_v27  ;;  %1901 = vmatprep.subr.bf16.mxu0 %v2148_v28  ;;  %v780_v27 = vld [vmem:[%s2567_s3 + $0x38] sm:$0xff]  ;;  %v2085_v34 = vpack.c.bf16 %v784_v33, %v783_v32  ;;  %v787_v38 = vld [vmem:[%s2567_s3 + $0x70] sm:$0xff]  ;;  %v955_v12 = vld [vmem:[%s2571_s7 + $0x8] sm:$0xff] }
  0x45   :  { %1923 = vmatprep.subr.bf16.mxu1 %v2149_v29  ;;  %v2079_v28 = vpack.c.bf16 %v780_v27, %v779_v26  ;;  %v781_v29 = vld [vmem:[%s2567_s3 + $0x40] sm:$0xff]  ;;  %v870_v8 = vld [vmem:[%s2569_s5 + $0x18] sm:$0xff]  ;;  %v1039_v26 = vld [vmem:[%s2573_s9 + $0x10] sm:$0xff] }
  0x46   :  { %v1037_v18 = vld [vmem:[%s2573_s9] sm:$0xff]  ;;  %v1040_v27 = vld [vmem:[%s2573_s9 + $0x18] sm:$0xff] }
  0x47   :  { %1902 = vmatpush3.bf16.msra.mxu0 %v2150_v30  ;;  %v782_v30 = vld [vmem:[%s2567_s3 + $0x48] sm:$0xff]  ;;  %v1817_v21 = vld [vmem:[%s2570_s6] ss:$0 sm:$0xff] }
  0x48   :  { %1924 = vmatpush3.bf16.msra.mxu1 %v2151_v31  ;;  %1931 = vmatprep.subr.bf16.mxu0 %v2152_v40  ;;  %v2082_v31 = vpack.c.bf16 %v782_v30, %v781_v29  ;;  %v1123_v29 = vld [vmem:[#allocation5] sm:$0xff] }
  0x49   :  { %1953 = vmatprep.subr.bf16.mxu1 %v2153_v41  ;;  %v2288_v41 = vmov 0.0   ;;  %v1127_v30 = vld [vmem:[#allocation5 + $0x20] sm:$0xff] }
  0x4a   :  { %645 = vmatmul.mubr.bf16.vlgmr.msra.gmra.mrb[0].mxu0 %v85_v37  ;;  %v2088_v37 = vpack.c.bf16 %v786_v36, %v785_v35  ;;  %v1823_v32 = vcombine.low %v1123_v29, %v1127_v30  ;;  %v1824_v33 = vcombine.high %v1123_v29, %v1127_v30  ;;  %v1184_v30 = vld [vmem:[#allocation5 + $0x1e8] sm:$0xff] }
  0x4b   :  { %685 = vmatmul.mubr.bf16.vlgmr.msra.gmra.mrb[0].mxu1 %v87_v39  ;;  %1932 = vmatpush3.bf16.msra.mxu0 %v2154_v42  ;;  %v788_v39 = vld [vmem:[%s2567_s3 + $0x78] sm:$0xff]  ;;  %v867_v42 = vld [vmem:[%s2569_s5] sm:$0xff] }
  0x4c   :  { %1954 = vmatpush3.bf16.msra.mxu1 %v2155_v43  ;;  %1933 = vmatprep.subr.bf16.mxu0 %v2156_v44  ;;  %v2091_v40 = vpack.c.bf16 %v788_v39, %v787_v38  ;;  %v868_v43 = vld [vmem:[%s2569_s5 + $0x8] sm:$0xff] }
  0x4d   :  { %1955 = vmatprep.subr.bf16.mxu1 %v2157_v45  ;;  %724 = vmatprep.mubr.bf16.mxu0 %v90_v10  ;;  %v2094_v44 = vpack.c.bf16 %v868_v43, %v867_v42  ;;  %v1816_v10 = vld [vmem:[%s2568_s4] ss:$0 sm:$0xff] }
  0x4e   :  { %764 = vmatprep.mubr.bf16.mxu1 %v92_v11  ;;  %v954_v11 = vld [vmem:[%s2571_s7] sm:$0xff] }
  0x4f   :  { %1934 = vmatpush3.bf16.msra.mxu0 %v2158_v46  ;;  %v2100_v16 = vpack.c.bf16 %v955_v12, %v954_v11  ;;  %v1155_v12 = vld [vmem:[#allocation5 + $0x100] sm:$0xff] }
  0x50   :  { %1956 = vmatpush3.bf16.msra.mxu1 %v2159_v47  ;;  %1935 = vmatprep.subr.bf16.mxu0 %v2160_v48  ;;  %v1751_v47 = vld [vmem:[%s2566_s2] ss:$0 sm:$0xff] }
  0x51   :  { %1957 = vmatprep.subr.bf16.mxu1 %v2161_v49 }
  0x53   :  { %1936 = vmatpush3.bf16.msra.mxu0 %v2162_v50 }
  0x54   :  { %1958 = vmatpush3.bf16.msra.mxu1 %v2163_v51  ;;  %1937 = vmatprep.subr.bf16.mxu0 %v2164_v52 }
  0x55   :  { %1959 = vmatprep.subr.bf16.mxu1 %v2165_v53 }
  0x57   :  { %1938 = vmatpush3.bf16.msra.mxu0 %v2166_v54 }
  0x58   :  { %1960 = vmatpush3.bf16.msra.mxu1 %v2167_v55  ;;  %1939 = vmatprep.subr.bf16.mxu0 %v2168_v56 }
  0x59   :  { %1961 = vmatprep.subr.bf16.mxu1 %v2169_v57 }
  0x5b   :  { %1940 = vmatpush3.bf16.msra.mxu0 %v2170_v58 }
  0x5c   :  { %1962 = vmatpush3.bf16.msra.mxu1 %v2171_v59  ;;  %1941 = vmatprep.subr.bf16.mxu0 %v2172_v60 }
  0x5d   :  { %1963 = vmatprep.subr.bf16.mxu1 %v2173_v61 }
  0x5f   :  { %1942 = vmatpush3.bf16.msra.mxu0 %v2174_v62 }
  0x60   :  { %1964 = vmatpush3.bf16.msra.mxu1 %v2175_v63  ;;  %1943 = vmatprep.subr.bf16.mxu0 %v2176_v0 }
  0x61   :  { %1965 = vmatprep.subr.bf16.mxu1 %v2177_v1 }
  0x63   :  { %1944 = vmatpush3.bf16.msra.mxu0 %v2178_v2 }
  0x64   :  { %1966 = vmatpush3.bf16.msra.mxu1 %v2179_v3  ;;  %1945 = vmatprep.subr.bf16.mxu0 %v2180_v4 }
  0x65   :  { %1967 = vmatprep.subr.bf16.mxu1 %v2181_v5 }
  0x67   :  { %1946 = vmatpush3.bf16.msra.mxu0 %v2182_v6 }
  0x68   :  { %1968 = vmatpush3.bf16.msra.mxu1 %v2183_v7  ;;  %2069 = vmatprep.subr.bf16.mxu0 %v2286_v19  ;;  %v869_v7 = vld [vmem:[%s2569_s5 + $0x10] sm:$0xff] }
  0x69   :  { %2093 = vmatprep.subr.bf16.mxu1 %v2286_v19  ;;  %v2097_v9 = vpack.c.bf16 %v870_v8, %v869_v7  ;;  %v1147_v8 = vld [vmem:[#allocation5 + $0xc0] sm:$0xff] }
  0x6a   :  { %725 = vmatmul.mubr.bf16.vlgmr.msra.gmra.mrb[4].mxu0 %v89_v14 }
  0x6b   :  { %765 = vmatmul.mubr.bf16.vlgmr.msra.gmra.mrb[4].mxu1 %v91_v15  ;;  %2071 = vmatpush3.bf16.msra.mxu0 %v2070_v20  ;;  %v1038_v20 = vld [vmem:[%s2573_s9 + $0x8] sm:$0xff] }
  0x6c   :  { %2072 = vmatprep.subr.bf16.mxu0 %v2286_v19  ;;  %2037 = vmatprep.mubr.msk.f32.mxu0 %vm2287_vm0, %v2288_v41  ;;  %v2103_v23 = vpack.c.bf16 %v1038_v20, %v1037_v18 }
  0x6d   :  { %2048 = vmatprep.mubr.msk.f32.mxu1 %vm2287_vm0, %v2288_v41  ;;  %2095 = vmatpush3.bf16.msra.mxu1 %v2094_v44  ;;  %v1148_v44 = vld [vmem:[#allocation5 + $0xc8] sm:$0xff] }
  0x6e   :  { %2096 = vmatprep.subr.bf16.mxu1 %v2286_v19 }
  0x6f   :  { %2074 = vmatpush3.bf16.msra.mxu0 %v2073_v22 }
  0x70   :  { %2075 = vmatprep.subr.bf16.mxu0 %v2286_v19 }
  0x71   :  { %2098 = vmatpush3.bf16.msra.mxu1 %v2097_v9  ;;  %v1151_v9 = vld [vmem:[#allocation5 + $0xe0] sm:$0xff] }
  0x72   :  { %2099 = vmatprep.subr.bf16.mxu1 %v2286_v19  ;;  %v1848_v11 = vcombine.high %v1147_v8, %v1151_v9 }
  0x73   :  { %2077 = vmatpush3.bf16.msra.mxu0 %v2076_v25 }
  0x74   :  { %2078 = vmatprep.subr.bf16.mxu0 %v2286_v19 }
  0x77   :  { %2080 = vmatpush3.bf16.msra.mxu0 %v2079_v28  ;;  %v2106_v28 = vpack.c.bf16 %v1040_v27, %v1039_v26  ;;  %v1179_v26 = vld [vmem:[#allocation5 + $0x1c0] sm:$0xff] }
  0x78   :  { %2081 = vmatprep.subr.bf16.mxu0 %v2286_v19  ;;  %v1183_v27 = vld [vmem:[#allocation5 + $0x1e0] sm:$0xff] }
  0x79   :  { %v1880_v29 = vcombine.high %v1179_v26, %v1183_v27 }
  0x7b   :  { %2083 = vmatpush3.bf16.msra.mxu0 %v2082_v31  ;;  %v1124_v31 = vld [vmem:[#allocation5 + $0x8] sm:$0xff] }
  0x7c   :  { %2084 = vmatprep.subr.bf16.mxu0 %v2286_v19 }
  0x7f   :  { %2086 = vmatpush3.bf16.msra.mxu0 %v2085_v34  ;;  %v1128_v34 = vld [vmem:[#allocation5 + $0x28] sm:$0xff] }
  0x80   :  { %2087 = vmatprep.subr.bf16.mxu0 %v2286_v19  ;;  %v1825_v35 = vcombine.low %v1124_v31, %v1128_v34  ;;  %v1826_v36 = vcombine.high %v1124_v31, %v1128_v34  ;;  %v1879_v31 = vcombine.low %v1179_v26, %v1183_v27  ;;  %v1125_v34 = vld [vmem:[#allocation5 + $0x10] sm:$0xff]  ;;  %v1178_v26 = vld [vmem:[#allocation5 + $0x1b8] sm:$0xff] }
  0x83   :  { %2089 = vmatpush3.bf16.msra.mxu0 %v2088_v37  ;;  %v1132_v37 = vld [vmem:[#allocation5 + $0x48] sm:$0xff] }
  0x84   :  { %2090 = vmatprep.subr.bf16.mxu0 %v2286_v19 }
  0x87   :  { %2092 = vmatpush3.bf16.msra.mxu0 %v2091_v40  ;;  %v1140_v40 = vld [vmem:[#allocation5 + $0x88] sm:$0xff] }
  0x88   :  { %1590 = vmatprep.subr.bf16.mxu0 %v1826_v36  ;;  %v1126_v36 = vld [vmem:[#allocation5 + $0x18] sm:$0xff] }
 0x11d   :  { %v1903_v45 = vpop.f32.mrb[0].mxu0 }
 0x11e   :  { %v1925_v46 = vpop.f32.mrb[0].mxu1  ;;  %v1904_v48 = vpop.f32.mrb[1].mxu0 }
 0x11f   :  { %v1926_v49 = vpop.f32.mrb[1].mxu1  ;;  %v1905_v50 = vadd.f32 %v1904_v48, %v1903_v45  ;;  %v1906_v52 = vpop.f32.mrb[2].mxu0  ;;  %v1152_v45 = vld [vmem:[#allocation5 + $0xe8] sm:$0xff] }
 0x120   :  { %v1927_v51 = vadd.f32 %v1926_v49, %v1925_v46  ;;  %v1928_v53 = vpop.f32.mrb[2].mxu1  ;;  %v1907_v54 = vpop.f32.mrb[3].mxu0  ;;  %v1850_v46 = vcombine.high %v1148_v44, %v1152_v45  ;;  %v1156_v48 = vld [vmem:[#allocation5 + $0x108] sm:$0xff] }
 0x121   :  { %v1929_v55 = vpop.f32.mrb[3].mxu1  ;;  %v647_v56 = vadd.f32 %v1905_v50, %v1751_v47  ;;  %v1849_v47 = vcombine.low %v1148_v44, %v1152_v45  ;;  %v1160_v49 = vld [vmem:[#allocation5 + $0x128] sm:$0xff] }
 0x122   :  { %v1858_v50 = vcombine.high %v1156_v48, %v1160_v49  ;;  %v1164_v52 = vld [vmem:[#allocation5 + $0x148] sm:$0xff] }
 0x123   :  { %v687_v57 = vadd.f32 %v1927_v51, %v647_v56  ;;  %v1857_v51 = vcombine.low %v1156_v48, %v1160_v49  ;;  %v1168_v53 = vld [vmem:[#allocation5 + $0x168] sm:$0xff]  ;;  %v1134_v48 = vld [vmem:[#allocation5 + $0x58] sm:$0xff] }
 0x124   :  { %v1866_v54 = vcombine.high %v1164_v52, %v1168_v53  ;;  %v1865_v55 = vcombine.low %v1164_v52, %v1168_v53  ;;  %v1172_v56 = vld [vmem:[#allocation5 + $0x188] sm:$0xff]  ;;  %v1138_v49 = vld [vmem:[#allocation5 + $0x78] sm:$0xff] }
 0x125   :  { %v1838_v53 = vcombine.high %v1134_v48, %v1138_v49 }
 0x13d   :  { %v1947_v58 = vpop.f32.mrb[4].mxu0 }
 0x13e   :  { %v1969_v59 = vpop.f32.mrb[4].mxu1  ;;  %v1948_v60 = vpop.f32.mrb[5].mxu0 }
 0x13f   :  { %v1949_v61 = vadd.f32 %v1948_v60, %v1947_v58  ;;  %v1970_v62 = vpop.f32.mrb[5].mxu1  ;;  %v1950_v63 = vpop.f32.mrb[6].mxu0  ;;  %v1819_v60 = vld [vmem:[%s2572_s8] ss:$0 sm:$0xff] }
 0x140   :  { %v1971_v0 = vadd.f32 %v1970_v62, %v1969_v59  ;;  %v1972_v1 = vpop.f32.mrb[6].mxu1  ;;  %v1951_v2 = vpop.f32.mrb[7].mxu0  ;;  %v1131_v62 = vld [vmem:[#allocation5 + $0x40] sm:$0xff] }
 0x141   :  { %v727_v3 = vadd.f32 %v1949_v61, %v687_v57  ;;  %v1973_v4 = vpop.f32.mrb[7].mxu1  ;;  %v1176_v57 = vld [vmem:[#allocation5 + $0x1a8] sm:$0xff]  ;;  %v1135_v63 = vld [vmem:[#allocation5 + $0x60] sm:$0xff] }
 0x142   :  { %v1874_v58 = vcombine.high %v1172_v56, %v1176_v57  ;;  %v1873_v59 = vcombine.low %v1172_v56, %v1176_v57  ;;  %v1139_v4 = vld [vmem:[#allocation5 + $0x80] sm:$0xff]  ;;  %v1142_v56 = vld [vmem:[#allocation5 + $0x98] sm:$0xff] }
 0x143   :  { %v767_v5 = vadd.f32 %v1971_v0, %v727_v3  ;;  %v1832_v3 = vcombine.high %v1131_v62, %v1135_v63  ;;  %v1146_v57 = vld [vmem:[#allocation5 + $0xb8] sm:$0xff] }
 0x145   :  { %v772_v6 = vmax.f32 %v767_v5, 0.0  ;;  %v1143_v5 = vld [vmem:[#allocation5 + $0xa0] sm:$0xff] }
 0x146   :  { %v1840_v7 = vcombine.high %v1139_v4, %v1143_v5 }
 0x147   :  { %2038 = vmatmul.mubr.f32.vlgmr.msra.gmra.mrb[8].mxu0 %v772_v6  ;;  %v1831_v6 = vcombine.low %v1131_v62, %v1135_v63  ;;  %v1149_v62 = vld [vmem:[#allocation5 + $0xd0] sm:$0xff] }
 0x148   :  { %1591 = vmatpush1.bf16.msra.mxu0 %v1825_v35  ;;  %v1129_v35 = vld [vmem:[#allocation5 + $0x30] sm:$0xff] }
 0x149   :  { %v1153_v63 = vld [vmem:[#allocation5 + $0xf0] sm:$0xff] }
 0x21a   :  { %v862_v13 = vpop.f32.mrb[8].mxu0 }
 0x21b   :  { %v863_v14 = vadd.f32 %v1816_v10, %v862_v13  ;;  %v2039_v15 = vpop.f32.mrb[9].mxu0  ;;  %v1839_v10 = vcombine.low %v1139_v4, %v1143_v5  ;;  %v1159_v13 = vld [vmem:[#allocation5 + $0x120] sm:$0xff]  ;;  %v1852_v4 = vcombine.high %v1149_v62, %v1153_v63 }
 0x21c   :  { %v1856_v15 = vcombine.high %v1155_v12, %v1159_v13  ;;  %v1855_v18 = vcombine.low %v1155_v12, %v1159_v13 }
 0x21d   :  { %v866_v17 = vmax.f32 %v863_v14, 0.0  ;;  %v1847_v14 = vcombine.low %v1147_v8, %v1151_v9  ;;  %v1158_v8 = vld [vmem:[#allocation5 + $0x118] sm:$0xff] }
 0x21e   :  { %v1162_v9 = vld [vmem:[#allocation5 + $0x138] sm:$0xff] }
 0x21f   :  { %2049 = vmatmul.mubr.msk.f32.vlgmr.msra.gmra.mrb[8].mxu1 %vm878_vm1, %v866_v17  ;;  %v1167_v17 = vld [vmem:[#allocation5 + $0x160] sm:$0xff]  ;;  %v1862_v13 = vcombine.high %v1158_v8, %v1162_v9 }
 0x220   :  { %2101 = vmatpush3.bf16.msra.mxu1 %v2100_v16  ;;  %2055 = vmatprep.mubr.msk.f32.mxu1 %vm2287_vm0, %v2288_v41  ;;  %v1163_v16 = vld [vmem:[#allocation5 + $0x140] sm:$0xff] }
 0x221   :  { %2102 = vmatprep.subr.bf16.mxu1 %v2286_v19  ;;  %v1864_v20 = vcombine.high %v1163_v16, %v1167_v17 }
 0x2f2   :  { %v948_v22 = vpop.f32.mrb[8].mxu1 }
 0x2f3   :  { %v949_v24 = vadd.f32 %v1817_v21, %v948_v22  ;;  %v2050_v25 = vpop.f32.mrb[9].mxu1  ;;  %v1171_v21 = vld [vmem:[#allocation5 + $0x180] sm:$0xff] }
 0x2f4   :  { %v1175_v22 = vld [vmem:[#allocation5 + $0x1a0] sm:$0xff] }
 0x2f5   :  { %2056 = vmatmul.mubr.msk.f32.vlgmr.msra.gmra.mrb[10].mxu1 %vm952_vm2, %v949_v24  ;;  %953 = vst.msk [vmem:[#allocation7] sm:$0xff] %vm952_vm2, %v949_v24  ;;  %v1872_v24 = vcombine.high %v1171_v21, %v1175_v22  ;;  %v1871_v25 = vcombine.low %v1171_v21, %v1175_v22 }
 0x2f6   :  { %2104 = vmatpush3.bf16.msra.mxu1 %v2103_v23  ;;  %2066 = vmatprep.mubr.msk.f32.mxu1 %vm2287_vm0, %v2288_v41  ;;  %v1144_v41 = vld [vmem:[#allocation5 + $0xa8] sm:$0xff]  ;;  %v1863_v23 = vcombine.low %v1163_v16, %v1167_v17  ;;  %v1166_v16 = vld [vmem:[#allocation5 + $0x158] sm:$0xff] }
 0x2f7   :  { %2105 = vmatprep.subr.bf16.mxu1 %v2286_v19  ;;  %v1136_v19 = vld [vmem:[#allocation5 + $0x68] sm:$0xff]  ;;  %v1842_v42 = vcombine.high %v1140_v40, %v1144_v41  ;;  %v1841_v43 = vcombine.low %v1140_v40, %v1144_v41  ;;  %v1170_v17 = vld [vmem:[#allocation5 + $0x178] sm:$0xff] }
 0x2f8   :  { %v1834_v38 = vcombine.high %v1132_v37, %v1136_v19  ;;  %v1833_v39 = vcombine.low %v1132_v37, %v1136_v19  ;;  %v1827_v37 = vcombine.low %v1125_v34, %v1129_v35  ;;  %v1828_v19 = vcombine.high %v1125_v34, %v1129_v35  ;;  %v1186_v34 = vld [vmem:[#allocation5 + $0x1f8] sm:$0xff] }
 0x2f9   :  { %v1870_v22 = vcombine.high %v1166_v16, %v1170_v17 }
 0x2fa   :  { %2107 = vmatpush3.bf16.msra.mxu1 %v2106_v28  ;;  %1592 = vmatprep.subr.bf16.mxu0 %v1834_v38  ;;  %v1180_v28 = vld [vmem:[#allocation5 + $0x1c8] sm:$0xff]  ;;  %v1130_v38 = vld [vmem:[#allocation5 + $0x38] sm:$0xff] }
 0x2fb   :  { %1549 = vmatprep.subr.bf16.mxu1 %v1824_v33  ;;  %1593 = vmatpush1.bf16.msra.mxu0 %v1833_v39  ;;  %v1882_v33 = vcombine.high %v1180_v28, %v1184_v30  ;;  %v2289_v39 = vmov 0   ;;  %v1829_v40 = vcombine.low %v1126_v36, %v1130_v38  ;;  %v1830_v41 = vcombine.high %v1126_v36, %v1130_v38 }
 0x2fc   :  { %1594 = vmatprep.subr.bf16.mxu0 %v1842_v42  ;;  %1622 = vmatprep.mubr.bf16.mxu0 %v2289_v39  ;;  %v1821_v42 = vld [vmem:[%s2574_s10] ss:$0 sm:$0xff]  ;;  %s2290_s10 = smov [#allocation7]  }
 0x2fd   :  { %s1727_s21 = sshll.u32 %s2290_s10, 4  ;;  %s1728_s21 = int_to_ptr.vmem [resolvable:$true] %s1727_s21 }
 0x2fe   :  { %s2228_s3 = scalar_lea.vmem %s1728_s21, 128  ;;  %p2233_p3 = scmp.lt.s32.totalorder %s1728_s21, %s1728_s21 }
 0x2ff   :  { %1595 = vmatpush1.bf16.msra.mxu0 %v1841_v43  ;;  %p2229_p2 = scmp.ne.s32.totalorder %s1728_s21, %s2228_s3  ;;  %p2234_p4 = scmp.lt.s32.totalorder %s2228_s3, %s2228_s3 }
 0x300   :  { %1596 = vmatprep.subr.bf16.mxu0 %v1850_v46  ;;  %v1133_v46 = vld [vmem:[#allocation5 + $0x50] sm:$0xff] }
 0x301   :  { %p2235_p5 = por %p2234_p4, %p2233_p3 }
 0x303   :  { %1597 = vmatpush1.bf16.msra.mxu0 %v1849_v47  ;;  %v1137_v47 = vld [vmem:[#allocation5 + $0x70] sm:$0xff]  ;;  %p2236_p6 = pnand %p2235_p5, %p2229_p2 }
 0x304   :  { %1598 = vmatprep.subr.bf16.mxu0 %v1858_v50  ;;  %v1836_v52 = vcombine.high %v1133_v46, %v1137_v47 }
 0x307   :  { %1599 = vmatpush1.bf16.msra.mxu0 %v1857_v51 }
 0x308   :  { %1600 = vmatprep.subr.bf16.mxu0 %v1866_v54  ;;  %v1141_v54 = vld [vmem:[#allocation5 + $0x90] sm:$0xff] }
 0x30b   :  { %1601 = vmatpush1.bf16.msra.mxu0 %v1865_v55  ;;  %v1145_v55 = vld [vmem:[#allocation5 + $0xb0] sm:$0xff] }
 0x30c   :  { %1602 = vmatprep.subr.bf16.mxu0 %v1874_v58  ;;  %v1835_v58 = vcombine.low %v1133_v46, %v1137_v47 }
 0x30f   :  { %1603 = vmatpush1.bf16.msra.mxu0 %v1873_v59  ;;  %v1837_v59 = vcombine.low %v1134_v48, %v1138_v49 }
 0x310   :  { %1604 = vmatprep.subr.bf16.mxu0 %v1882_v33  ;;  %v1182_v33 = vld [vmem:[#allocation5 + $0x1d8] sm:$0xff] }
 0x3c8   :  { %v1032_v61 = vpop.f32.mrb[10].mxu1 }
 0x3c9   :  { %v1033_v0 = vadd.f32 %v1819_v60, %v1032_v61  ;;  %v2057_v1 = vpop.f32.mrb[11].mxu1  ;;  %v1844_v60 = vcombine.high %v1141_v54, %v1145_v55  ;;  %v1846_v61 = vcombine.high %v1142_v56, %v1146_v57 }
 0x3ca   :  { %v1154_v1 = vld [vmem:[#allocation5 + $0xf8] sm:$0xff] }
 0x3cb   :  { %v1036_v2 = vmax.f32 %v1033_v0, 0.0  ;;  %v1150_v0 = vld [vmem:[#allocation5 + $0xd8] sm:$0xff] }
 0x3cc   :  { %v1854_v5 = vcombine.high %v1150_v0, %v1154_v1 }
 0x3cd   :  { %2067 = vmatmul.mubr.msk.f32.vlgmr.msra.gmra.mrb[12].mxu1 %vm878_vm1, %v1036_v2  ;;  %v1843_v2 = vcombine.low %v1141_v54, %v1145_v55 }
 0x3ce   :  { %1550 = vmatpush1.bf16.msra.mxu1 %v1823_v32  ;;  %v1881_v32 = vcombine.low %v1180_v28, %v1184_v30  ;;  %1581 = vmatprep.mubr.bf16.mxu1 %v2289_v39  ;;  %v1869_v28 = vcombine.low %v1166_v16, %v1170_v17 }
 0x3cf   :  { %1551 = vmatprep.subr.bf16.mxu1 %v1832_v3  ;;  %v1845_v3 = vcombine.low %v1142_v56, %v1146_v57 }
 0x3d0   :  { %1605 = vmatpush1.bf16.msra.mxu0 %v1881_v32  ;;  %v1185_v32 = vld [vmem:[#allocation5 + $0x1f0] sm:$0xff] }
 0x3d1   :  { %1672 = vmatprep.subr.bf16.mxu0 %v1830_v41 }
 0x3d2   :  { %1552 = vmatpush1.bf16.msra.mxu1 %v1831_v6  ;;  %v1157_v6 = vld [vmem:[#allocation5 + $0x110] sm:$0xff] }
 0x3d3   :  { %1553 = vmatprep.subr.bf16.mxu1 %v1840_v7  ;;  %v1161_v7 = vld [vmem:[#allocation5 + $0x130] sm:$0xff] }
 0x3d4   :  { %v1860_v12 = vcombine.high %v1157_v6, %v1161_v7 }
 0x3d6   :  { %1554 = vmatpush1.bf16.msra.mxu1 %v1839_v10  ;;  %v1851_v10 = vcombine.low %v1149_v62, %v1153_v63 }
 0x3d7   :  { %1555 = vmatprep.subr.bf16.mxu1 %v1848_v11  ;;  %v1853_v11 = vcombine.low %v1150_v0, %v1154_v1 }
 0x3da   :  { %1556 = vmatpush1.bf16.msra.mxu1 %v1847_v14  ;;  %v1165_v14 = vld [vmem:[#allocation5 + $0x150] sm:$0xff] }
 0x3db   :  { %1557 = vmatprep.subr.bf16.mxu1 %v1856_v15  ;;  %v1169_v15 = vld [vmem:[#allocation5 + $0x170] sm:$0xff] }
 0x3dc   :  { %v1868_v21 = vcombine.high %v1165_v14, %v1169_v15  ;;  %v1867_v27 = vcombine.low %v1165_v14, %v1169_v15 }
 0x3de   :  { %1558 = vmatpush1.bf16.msra.mxu1 %v1855_v18  ;;  %v1859_v18 = vcombine.low %v1157_v6, %v1161_v7 }
 0x3df   :  { %1559 = vmatprep.subr.bf16.mxu1 %v1864_v20  ;;  %v1861_v20 = vcombine.low %v1158_v8, %v1162_v9 }
 0x3e2   :  { %1560 = vmatpush1.bf16.msra.mxu1 %v1863_v23  ;;  %v1173_v23 = vld [vmem:[#allocation5 + $0x190] sm:$0xff] }
 0x3e3   :  { %1561 = vmatprep.subr.bf16.mxu1 %v1872_v24  ;;  %v1177_v24 = vld [vmem:[#allocation5 + $0x1b0] sm:$0xff] }
 0x3e4   :  { %v1875_v35 = vcombine.low %v1173_v23, %v1177_v24 }
 0x3e6   :  { %1562 = vmatpush1.bf16.msra.mxu1 %v1871_v25  ;;  %v1174_v25 = vld [vmem:[#allocation5 + $0x198] sm:$0xff] }
 0x3e7   :  { %1563 = vmatprep.subr.bf16.mxu1 %v1880_v29  ;;  %v1876_v29 = vcombine.high %v1173_v23, %v1177_v24  ;;  %v1878_v30 = vcombine.high %v1174_v25, %v1178_v26  ;;  %v1877_v36 = vcombine.low %v1174_v25, %v1178_v26 }
 0x3ea   :  { %1564 = vmatpush1.bf16.msra.mxu1 %v1879_v31  ;;  %v1181_v31 = vld [vmem:[#allocation5 + $0x1d0] sm:$0xff] }
 0x3eb   :  { %1631 = vmatprep.subr.bf16.mxu1 %v1828_v19  ;;  %v1886_v19 = vcombine.high %v1182_v33, %v1186_v34  ;;  %v1883_v38 = vcombine.low %v1181_v31, %v1185_v32 }
 0x4a0   :  { %v1117_v43 = vpop.f32.mrb[12].mxu1 }
 0x4a1   :  { %v1118_v44 = vadd.f32 %v1821_v42, %v1117_v43  ;;  %v2068_v45 = vpop.f32.mrb[13].mxu1 }
 0x4a3   :  { %v1121_v50 = vmax.f32 %v1118_v44, 0.0 }
 0x4a5   :  { %v2531_v51 = vpack.c.bf16 %v1121_v50, %v1121_v50 }
 0x4a7   :  { %1582 = vmatmul.mubr.bf16.vlgmr.msra.gmra.mrb[16].mxu1 %v2531_v51  ;;  %1623 = vmatmul.mubr.bf16.vlgmr.msra.gmra.mrb[12].mxu0 %v2531_v51 }
 0x4a8   :  { %1632 = vmatpush1.bf16.msra.mxu1 %v1827_v37  ;;  %1673 = vmatpush1.bf16.msra.mxu0 %v1829_v40  ;;  %v1884_v37 = vcombine.high %v1181_v31, %v1185_v32 }
 0x4a9   :  { %1633 = vmatprep.subr.bf16.mxu1 %v1836_v52  ;;  %1674 = vmatprep.subr.bf16.mxu0 %v1838_v53 }
 0x4aa   :  { %1663 = vmatprep.mubr.bf16.mxu1 %v2289_v39  ;;  %1704 = vmatprep.mubr.bf16.mxu0 %v2289_v39  ;;  %v1885_v39 = vcombine.low %v1182_v33, %v1186_v34 }
 0x4ac   :  { %1634 = vmatpush1.bf16.msra.mxu1 %v1835_v58  ;;  %1675 = vmatpush1.bf16.msra.mxu0 %v1837_v59 }
 0x4ad   :  { %1635 = vmatprep.subr.bf16.mxu1 %v1844_v60  ;;  %1676 = vmatprep.subr.bf16.mxu0 %v1846_v61 }
 0x4b0   :  { %1636 = vmatpush1.bf16.msra.mxu1 %v1843_v2  ;;  %1677 = vmatpush1.bf16.msra.mxu0 %v1845_v3 }
 0x4b1   :  { %1637 = vmatprep.subr.bf16.mxu1 %v1852_v4  ;;  %1678 = vmatprep.subr.bf16.mxu0 %v1854_v5 }
 0x4b4   :  { %1638 = vmatpush1.bf16.msra.mxu1 %v1851_v10  ;;  %1679 = vmatpush1.bf16.msra.mxu0 %v1853_v11 }
 0x4b5   :  { %1639 = vmatprep.subr.bf16.mxu1 %v1860_v12  ;;  %1680 = vmatprep.subr.bf16.mxu0 %v1862_v13 }
 0x4b8   :  { %1640 = vmatpush1.bf16.msra.mxu1 %v1859_v18  ;;  %1681 = vmatpush1.bf16.msra.mxu0 %v1861_v20 }
 0x4b9   :  { %1641 = vmatprep.subr.bf16.mxu1 %v1868_v21  ;;  %1682 = vmatprep.subr.bf16.mxu0 %v1870_v22 }
 0x4bc   :  { %1642 = vmatpush1.bf16.msra.mxu1 %v1867_v27  ;;  %1683 = vmatpush1.bf16.msra.mxu0 %v1869_v28 }
 0x4bd   :  { %1643 = vmatprep.subr.bf16.mxu1 %v1876_v29  ;;  %1684 = vmatprep.subr.bf16.mxu0 %v1878_v30 }
 0x4c0   :  { %1644 = vmatpush1.bf16.msra.mxu1 %v1875_v35  ;;  %1685 = vmatpush1.bf16.msra.mxu0 %v1877_v36 }
 0x4c1   :  { %1645 = vmatprep.subr.bf16.mxu1 %v1884_v37  ;;  %1686 = vmatprep.subr.bf16.mxu0 %v1886_v19 }
 0x4c4   :  { %1646 = vmatpush1.bf16.msra.mxu1 %v1883_v38  ;;  %1687 = vmatpush1.bf16.msra.mxu0 %v1885_v39 }
 0x4c7   :  { %1664 = vmatmul.mubr.bf16.vlgmr.msra.gmra.mrb[20].mxu1 %v2531_v51  ;;  %1705 = vmatmul.mubr.bf16.vlgmr.msra.gmra.mrb[16].mxu0 %v2531_v51 }
 0x4c8   :  { %2239 = shalt.err (!%p2236_p6)
}
 0x4c9   :  { %s2240_s30 = scalar_lea.hbm %s2577_s13, 128 }
 0x4ca   :  { %p2241_p7 = scmp.ne.s32.totalorder %s2577_s13, %s2240_s30  ;;  %p2244_p8 = scmp.lt.u32.totalorder %s2240_s30, %s2577_s13 }
 0x4cc   :  { %p2246_p9 = pnand %p2244_p8, %p2241_p7 }
 0x4ce   :  { %2249 = shalt.err (!%p2246_p9)
}
 0x4cf   :  { %1730 = dma.vmem_to_hbm [thread:$0]  %s1728_s21, 128, %s2577_s13, [#allocation4]   ;;  %v1189_v40 = vlaneseq  ;;  %v1187_v44 = vld [vmem:[%s2576_s12] sm:$0xff] }
 0x4d0   :  { %s2291_s12 = smov [#allocation8]  }
 0x4d1   :  { %v1190_v41 = vshrl.u32 %v1189_v40, 7  ;;  %s1737_s13 = sshll.u32 %s2291_s12, 4  ;;  %s1738_s13 = int_to_ptr.vmem [resolvable:$true] %s1737_s13 }
 0x4d2   :  { %s2250_s4 = scalar_lea.vmem %s1738_s13, 1024  ;;  %p2255_p11 = scmp.lt.s32.totalorder %s1738_s13, %s1738_s13 }
 0x4d3   :  { %v1191_v42 = vsub.s32 0, %v1190_v41  ;;  %v1199_v43 = vsub.s32 2, %v1190_v41  ;;  %v1195_v45 = vsub.s32 1, %v1190_v41  ;;  %v1203_v46 = vsub.s32 3, %v1190_v41  ;;  %p2251_p10 = scmp.ne.s32.totalorder %s1738_s13, %s2250_s4  ;;  %p2256_p12 = scmp.lt.s32.totalorder %s2250_s4, %s2250_s4 }
 0x4d4   :  { %v1207_v63 = vsub.s32 4, %v1190_v41  ;;  %v1215_v0 = vsub.s32 6, %v1190_v41  ;;  %v1211_v1 = vsub.s32 5, %v1190_v41  ;;  %v1219_v2 = vsub.s32 7, %v1190_v41 }
 0x4d5   :  { %v1192_v47 = vrot.slane %v1187_v44, %v1191_v42  ;;  %v1200_v48 = vrot.slane %v1187_v44, %v1199_v43  ;;  %v1196_v49 = vrot.slane %v1187_v44, %v1195_v45  ;;  %v1204_v50 = vrot.slane %v1187_v44, %v1203_v46  ;;  %p2257_p13 = por %p2256_p12, %p2255_p11 }
 0x4d6   :  { %v1208_v3 = vrot.slane %v1187_v44, %v1207_v63  ;;  %v1216_v4 = vrot.slane %v1187_v44, %v1215_v0  ;;  %v1212_v5 = vrot.slane %v1187_v44, %v1211_v1  ;;  %v1220_v6 = vrot.slane %v1187_v44, %v1219_v2 }
 0x4d7   :  { %p2258_p0 = pnand %p2257_p13, %p2251_p10 }
 0x57a   :  { %v1583_v51 = vpop.f32.mrb[16].mxu1  ;;  %v1624_v52 = vpop.f32.mrb[12].mxu0 }
 0x57b   :  { %v1584_v53 = vadd.f32 %v1583_v51, %v1192_v47  ;;  %v1625_v54 = vadd.f32 %v1624_v52, %v1200_v48  ;;  %v1585_v55 = vpop.f32.mrb[17].mxu1  ;;  %v1626_v56 = vpop.f32.mrb[13].mxu0 }
 0x57c   :  { %v1586_v57 = vadd.f32 %v1585_v55, %v1196_v49  ;;  %v1627_v58 = vadd.f32 %v1626_v56, %v1204_v50  ;;  %v1587_v59 = vpop.f32.mrb[18].mxu1  ;;  %v1628_v60 = vpop.f32.mrb[14].mxu0 }
 0x57d   :  { %1713 = vst [vmem:[#allocation8] sm:$0xff] %v1584_v53  ;;  %1715 = vst [vmem:[#allocation8 + $0x10] sm:$0xff] %v1625_v54  ;;  %v1588_v61 = vpop.f32.mrb[19].mxu1  ;;  %v1629_v62 = vpop.f32.mrb[15].mxu0 }
 0x57e   :  { %1714 = vst [vmem:[#allocation8 + $0x8] sm:$0xff] %v1586_v57  ;;  %1716 = vst [vmem:[#allocation8 + $0x18] sm:$0xff] %v1627_v58 }
 0x59a   :  { %v1665_v7 = vpop.f32.mrb[20].mxu1  ;;  %v1706_v8 = vpop.f32.mrb[16].mxu0 }
 0x59b   :  { %v1666_v9 = vadd.f32 %v1665_v7, %v1208_v3  ;;  %v1707_v10 = vadd.f32 %v1706_v8, %v1216_v4  ;;  %v1667_v11 = vpop.f32.mrb[21].mxu1  ;;  %v1708_v12 = vpop.f32.mrb[17].mxu0 }
 0x59c   :  { %v1668_v13 = vadd.f32 %v1667_v11, %v1212_v5  ;;  %v1709_v14 = vadd.f32 %v1708_v12, %v1220_v6  ;;  %v1669_v15 = vpop.f32.mrb[22].mxu1  ;;  %v1710_v16 = vpop.f32.mrb[18].mxu0 }
 0x59d   :  { %1717 = vst [vmem:[#allocation8 + $0x20] sm:$0xff] %v1666_v9  ;;  %1719 = vst [vmem:[#allocation8 + $0x30] sm:$0xff] %v1707_v10  ;;  %v1670_v17 = vpop.f32.mrb[23].mxu1  ;;  %v1711_v18 = vpop.f32.mrb[19].mxu0 }
 0x59e   :  { %1718 = vst [vmem:[#allocation8 + $0x28] sm:$0xff] %v1668_v13  ;;  %1720 = vst [vmem:[#allocation8 + $0x38] sm:$0xff] %v1709_v14 }
 0x59f   :  { %2261 = shalt.err (!%p2258_p0)
}
 0x5a0   :  { %s2262_s7 = scalar_lea.hbm %s2578_s14, 1024 }
 0x5a1   :  { %p2263_p1 = scmp.ne.s32.totalorder %s2578_s14, %s2262_s7  ;;  %p2266_p2 = scmp.lt.u32.totalorder %s2262_s7, %s2578_s14 }
 0x5a3   :  { %p2268_p3 = pnand %p2266_p2, %p2263_p1 }
 0x5a5   :  { %2271 = shalt.err (!%p2268_p3)
}
 0x5a6   :  { %1740 = dma.vmem_to_hbm [thread:$0]  %s1738_s13, 1024, %s2578_s14, [#allocation9]  }
 0x5a7   :  { %2276 = dma.done.wait [#allocation4], 128  }
 0x5a8   :  { %2277 = vsyncadd [#allocation4], 4294967168 }
 0x5a9   :  { %2278 = dma.done.wait [#allocation9], 1024  }
 0x5aa   :  { %2279 = vsyncadd [#allocation9], 4294966272 }
 0x5ab   :  { %1747 = vsyncpa [#allocation3], 1 }
 0x5ac   :  { %1748 = vsyncpa [#allocation6], 1 }
 0x5ad   :  { %1749 = vsyncpa [#allocation4], 1 }
 0x5ae   :  { %1750 = vsyncpa [#allocation9], 1 }

// kernel: tpu_custom_call.1
= control target key start
LH: loop header
LB: loop body
LE: loop exit
PB: predicated region body
PF: predicated region fallthrough
CT: control target
= control target key end

     0   :  { %20 = vsyncpa [#allocation3], 0  ;;  %s2564_s0 = inlined_call_operand.vmem [shape: f32[8,1024], index: 0, kind: input, shape index: {}]   ;;  %s2565_s1 = inlined_call_operand.hbm [shape: bf16[1024,128], index: 1, kind: input, shape index: {}]   ;;  %s2566_s2 = inlined_call_operand.vmem [shape: f32[1,128], index: 2, kind: input, shape index: {}]   ;;  %s2567_s3 = inlined_call_operand.vmem [shape: f32[128,32], index: 3, kind: input, shape index: {}]   ;;  %s2568_s4 = inlined_call_operand.vmem [shape: f32[1,32], index: 4, kind: input, shape index: {}]   ;;  %s2569_s5 = inlined_call_operand.vmem [shape: f32[32,16], index: 5, kind: input, shape index: {}]   ;;  %s2570_s6 = inlined_call_operand.vmem [shape: f32[1,16], index: 6, kind: input, shape index: {}]   ;;  %s2571_s7 = inlined_call_operand.vmem [shape: f32[16,32], index: 7, kind: input, shape index: {}]   ;;  %s2572_s8 = inlined_call_operand.vmem [shape: f32[1,32], index: 8, kind: input, shape index: {}]   ;;  %s2573_s9 = inlined_call_operand.vmem [shape: f32[32,128], index: 9, kind: input, shape index: {}]   ;;  %s2574_s10 = inlined_call_operand.vmem [shape: f32[1,128], index: 10, kind: input, shape index: {}]   ;;  %s2575_s11 = inlined_call_operand.hbm [shape: bf16[128,1024], index: 11, kind: input, shape index: {}]   ;;  %s2576_s12 = inlined_call_operand.vmem [shape: f32[1,1024], index: 12, kind: input, shape index: {}]   ;;  %s2577_s13 = inlined_call_operand.hbm [shape: f32[8,16], index: 13, kind: output, shape index: {0}]   ;;  %s2578_s14 = inlined_call_operand.hbm [shape: f32[8,1024], index: 14, kind: output, shape index: {1}]  }
   0x1   :  { %21 = vsyncpa [#allocation6], 0 }
   0x2   :  { %22 = vsyncpa [#allocation4], 0 }
   0x3   :  { %23 = vsyncpa [#allocation9], 0  ;;  %s2280_s29 = smov [#allocation2]   ;;  %s2184_s17 = scalar_lea.hbm %s2565_s1, 8192 }
   0x4   :  { %s31_s30 = sshll.u32 %s2280_s29, 4  ;;  %p2185_p0 = scmp.ne.s32.totalorder %s2565_s1, %s2184_s17  ;;  %s32_s30 = int_to_ptr.vmem [resolvable:$true] %s31_s30 }
   0x5   :  { %p2188_p1 = scmp.lt.u32.totalorder %s2184_s17, %s2565_s1 }
   0x7   :  { %p2190_p2 = pnand %p2188_p1, %p2185_p0 }
   0x9   :  { %2193 = shalt.err (!%p2190_p2)
}
   0xa   :  { %s2194_s22 = scalar_lea.vmem %s32_s30, 8192  ;;  %p2199_p4 = scmp.lt.s32.totalorder %s32_s30, %s32_s30 }
   0xb   :  { %p2195_p3 = scmp.ne.s32.totalorder %s32_s30, %s2194_s22  ;;  %p2200_p5 = scmp.lt.s32.totalorder %s2194_s22, %s2194_s22 }
   0xd   :  { %p2201_p6 = por %p2200_p5, %p2199_p4 }
   0xf   :  { %p2202_p7 = pnand %p2201_p6, %p2195_p3 }
  0x11   :  { %2205 = shalt.err (!%p2202_p7)
}
  0x12   :  { %s2281_s23 = smov 64   ;;  %s2282_s24 = smov 4  }
  0x13   :  { %37 = dma.hbm_to_vmem [thread:$0]  %s2565_s1, 8192, %s32_s30, [#allocation3], %s2281_s23, %s2281_s23, %s2282_s24  }
  0x14   :  { %s2283_s27 = smov [#allocation5]   ;;  %s2206_s16 = scalar_lea.hbm %s2575_s11, 8192 }
  0x15   :  { %s61_s28 = sshll.u32 %s2283_s27, 4  ;;  %p2207_p8 = scmp.ne.s32.totalorder %s2575_s11, %s2206_s16  ;;  %s62_s28 = int_to_ptr.vmem [resolvable:$true] %s61_s28 }
  0x16   :  { %p2210_p9 = scmp.lt.u32.totalorder %s2206_s16, %s2575_s11 }
  0x18   :  { %p2212_p10 = pnand %p2210_p9, %p2207_p8 }
  0x1a   :  { %2215 = shalt.err (!%p2212_p10)
}
  0x1b   :  { %s2216_s21 = scalar_lea.vmem %s62_s28, 8192  ;;  %p2221_p12 = scmp.lt.s32.totalorder %s62_s28, %s62_s28 }
  0x1c   :  { %p2217_p11 = scmp.ne.s32.totalorder %s62_s28, %s2216_s21  ;;  %p2222_p13 = scmp.lt.s32.totalorder %s2216_s21, %s2216_s21 }
  0x1e   :  { %p2223_p0 = por %p2222_p13, %p2221_p12 }
  0x20   :  { %p2224_p1 = pnand %p2223_p0, %p2217_p11 }
  0x22   :  { %2227 = shalt.err (!%p2224_p1)
}
  0x23   :  { %s2284_s1 = smov 512   ;;  %s2285_s30 = smov 32  }
  0x24   :  { %67 = dma.hbm_to_vmem [thread:$0]  %s2575_s11, 8192, %s62_s28, [#allocation6], %s2284_s1, %s2284_s1, %s2285_s30  }
  0x25   :  { %2272 = dma.done.wait [#allocation3], 8192  }
  0x26   :  { %2273 = vsyncadd [#allocation3], 4294959104 }
  0x27   :  { %2274 = dma.done.wait [#allocation6], 8192  }
  0x28   :  { %2275 = vsyncadd [#allocation6], 4294959104  ;;  %v2120_v0 = vld [vmem:[#allocation2 + $0x40] sm:$0xff]   ;;  %v2124_v4 = vld [vmem:[#allocation2 + $0x48] sm:$0xff]   ;;  %vm2287_vm0 = vmmov 0   ;;  %vm878_vm1 = vcmask 261120  }
  0x29   :  { %v2121_v1 = vld [vmem:[#allocation2 + $0xc0] sm:$0xff]   ;;  %1887 = vmatprep.subr.bf16.mxu0 %v2120_v0  ;;  %v2125_v5 = vld [vmem:[#allocation2 + $0xc8] sm:$0xff]   ;;  %v2128_v8 = vld [vmem:[#allocation2 + $0x50] sm:$0xff]   ;;  %vm952_vm2 = vcmask 130048  }
  0x2a   :  { %v2122_v2 = vld [vmem:[#allocation2] sm:$0xff]   ;;  %1909 = vmatprep.subr.bf16.mxu1 %v2121_v1  ;;  %v2126_v6 = vld [vmem:[#allocation2 + $0x8] sm:$0xff]   ;;  %v2129_v9 = vld [vmem:[#allocation2 + $0xd0] sm:$0xff]  }
  0x2b   :  { %v2123_v3 = vld [vmem:[#allocation2 + $0x80] sm:$0xff]   ;;  %1888 = vmatpush3.bf16.msra.mxu0 %v2122_v2  ;;  %v2127_v7 = vld [vmem:[#allocation2 + $0x88] sm:$0xff]   ;;  %v2130_v10 = vld [vmem:[#allocation2 + $0x10] sm:$0xff]  }
  0x2c   :  { %1910 = vmatpush3.bf16.msra.mxu1 %v2123_v3  ;;  %1889 = vmatprep.subr.bf16.mxu0 %v2124_v4  ;;  %v2131_v11 = vld [vmem:[#allocation2 + $0x90] sm:$0xff]   ;;  %v2132_v12 = vld [vmem:[#allocation2 + $0x58] sm:$0xff]   ;;  %v2136_v16 = vld [vmem:[#allocation2 + $0x60] sm:$0xff]  }
  0x2d   :  { %1911 = vmatprep.subr.bf16.mxu1 %v2125_v5  ;;  %v2133_v13 = vld [vmem:[#allocation2 + $0xd8] sm:$0xff]   ;;  %v2137_v17 = vld [vmem:[#allocation2 + $0xe0] sm:$0xff]   ;;  %v2140_v20 = vld [vmem:[#allocation2 + $0x68] sm:$0xff]  }
  0x2e   :  { %v2134_v14 = vld [vmem:[#allocation2 + $0x18] sm:$0xff]   ;;  %v2138_v18 = vld [vmem:[#allocation2 + $0x20] sm:$0xff]   ;;  %v2141_v21 = vld [vmem:[#allocation2 + $0xe8] sm:$0xff]  }
  0x2f   :  { %1890 = vmatpush3.bf16.msra.mxu0 %v2126_v6  ;;  %v2135_v15 = vld [vmem:[#allocation2 + $0x98] sm:$0xff]   ;;  %v2139_v19 = vld [vmem:[#allocation2 + $0xa0] sm:$0xff]   ;;  %v2142_v22 = vld [vmem:[#allocation2 + $0x28] sm:$0xff]  }
  0x30   :  { %1912 = vmatpush3.bf16.msra.mxu1 %v2127_v7  ;;  %1891 = vmatprep.subr.bf16.mxu0 %v2128_v8  ;;  %v2143_v23 = vld [vmem:[#allocation2 + $0xa8] sm:$0xff]   ;;  %v2144_v24 = vld [vmem:[#allocation2 + $0x70] sm:$0xff]   ;;  %v2148_v28 = vld [vmem:[#allocation2 + $0x78] sm:$0xff]  }
  0x31   :  { %1913 = vmatprep.subr.bf16.mxu1 %v2129_v9  ;;  %v2145_v25 = vld [vmem:[#allocation2 + $0xf0] sm:$0xff]   ;;  %v2149_v29 = vld [vmem:[#allocation2 + $0xf8] sm:$0xff]   ;;  %v78_v32 = vld [vmem:[%s2564_s0 + $0x8] sm:$0xff] }
  0x32   :  { %v2146_v26 = vld [vmem:[#allocation2 + $0x30] sm:$0xff]   ;;  %v2150_v30 = vld [vmem:[#allocation2 + $0x38] sm:$0xff]   ;;  %v77_v34 = vld [vmem:[%s2564_s0] sm:$0xff]  ;;  %v86_v35 = vpack.c.bf16 %v78_v32, %v78_v32 }
  0x33   :  { %1892 = vmatpush3.bf16.msra.mxu0 %v2130_v10  ;;  %v2147_v27 = vld [vmem:[#allocation2 + $0xb0] sm:$0xff]   ;;  %v2151_v31 = vld [vmem:[#allocation2 + $0xb8] sm:$0xff]   ;;  %v85_v37 = vpack.c.bf16 %v77_v34, %v77_v34  ;;  %v2152_v40 = vld [vmem:[#allocation2 + $0x140] sm:$0xff]  }
  0x34   :  { %1914 = vmatpush3.bf16.msra.mxu1 %v2131_v11  ;;  %1893 = vmatprep.subr.bf16.mxu0 %v2132_v12  ;;  %v80_v33 = vld [vmem:[%s2564_s0 + $0x18] sm:$0xff]  ;;  %v79_v38 = vld [vmem:[%s2564_s0 + $0x10] sm:$0xff]  ;;  %v2153_v41 = vld [vmem:[#allocation2 + $0x1c0] sm:$0xff]  }
  0x35   :  { %1915 = vmatprep.subr.bf16.mxu1 %v2133_v13  ;;  %v88_v36 = vpack.c.bf16 %v80_v33, %v80_v33  ;;  %v87_v39 = vpack.c.bf16 %v79_v38, %v79_v38  ;;  %644 = vmatprep.mubr.bf16.mxu0 %v86_v35  ;;  %v2154_v42 = vld [vmem:[#allocation2 + $0x100] sm:$0xff]   ;;  %v2156_v44 = vld [vmem:[#allocation2 + $0x148] sm:$0xff]   ;;  %v2160_v48 = vld [vmem:[#allocation2 + $0x150] sm:$0xff]  }
  0x36   :  { %v2155_v43 = vld [vmem:[#allocation2 + $0x180] sm:$0xff]   ;;  %v2157_v45 = vld [vmem:[#allocation2 + $0x1c8] sm:$0xff]   ;;  %v2161_v49 = vld [vmem:[#allocation2 + $0x1d0] sm:$0xff]  }
  0x37   :  { %1894 = vmatpush3.bf16.msra.mxu0 %v2134_v14  ;;  %684 = vmatprep.mubr.bf16.mxu1 %v88_v36  ;;  %v2158_v46 = vld [vmem:[#allocation2 + $0x108] sm:$0xff]   ;;  %v2162_v50 = vld [vmem:[#allocation2 + $0x110] sm:$0xff]   ;;  %v2164_v52 = vld [vmem:[#allocation2 + $0x158] sm:$0xff]  }
  0x38   :  { %1916 = vmatpush3.bf16.msra.mxu1 %v2135_v15  ;;  %1895 = vmatprep.subr.bf16.mxu0 %v2136_v16  ;;  %v2159_v47 = vld [vmem:[#allocation2 + $0x188] sm:$0xff]   ;;  %v2163_v51 = vld [vmem:[#allocation2 + $0x190] sm:$0xff]   ;;  %v2165_v53 = vld [vmem:[#allocation2 + $0x1d8] sm:$0xff]  }
  0x39   :  { %1917 = vmatprep.subr.bf16.mxu1 %v2137_v17  ;;  %v2166_v54 = vld [vmem:[#allocation2 + $0x118] sm:$0xff]   ;;  %v2168_v56 = vld [vmem:[#allocation2 + $0x160] sm:$0xff]   ;;  %v2172_v60 = vld [vmem:[#allocation2 + $0x168] sm:$0xff]  }
  0x3a   :  { %v2167_v55 = vld [vmem:[#allocation2 + $0x198] sm:$0xff]   ;;  %v2169_v57 = vld [vmem:[#allocation2 + $0x1e0] sm:$0xff]   ;;  %v2173_v61 = vld [vmem:[#allocation2 + $0x1e8] sm:$0xff]  }
  0x3b   :  { %1896 = vmatpush3.bf16.msra.mxu0 %v2138_v18  ;;  %v2170_v58 = vld [vmem:[#allocation2 + $0x120] sm:$0xff]   ;;  %v2174_v62 = vld [vmem:[#allocation2 + $0x128] sm:$0xff]   ;;  %v2176_v0 = vld [vmem:[#allocation2 + $0x170] sm:$0xff]  }
  0x3c   :  { %1918 = vmatpush3.bf16.msra.mxu1 %v2139_v19  ;;  %1897 = vmatprep.subr.bf16.mxu0 %v2140_v20  ;;  %v2171_v59 = vld [vmem:[#allocation2 + $0x1a0] sm:$0xff]   ;;  %v2175_v63 = vld [vmem:[#allocation2 + $0x1a8] sm:$0xff]   ;;  %v2177_v1 = vld [vmem:[#allocation2 + $0x1f0] sm:$0xff]   ;;  %v2286_v19 = vmov 0.0|0.0  }
  0x3d   :  { %1919 = vmatprep.subr.bf16.mxu1 %v2141_v21  ;;  %v2178_v2 = vld [vmem:[#allocation2 + $0x130] sm:$0xff]   ;;  %v2180_v4 = vld [vmem:[#allocation2 + $0x178] sm:$0xff]   ;;  %v82_v8 = vld [vmem:[%s2564_s0 + $0x28] sm:$0xff] }
  0x3e   :  { %v2179_v3 = vld [vmem:[#allocation2 + $0x1b0] sm:$0xff]   ;;  %v2181_v5 = vld [vmem:[#allocation2 + $0x1f8] sm:$0xff]   ;;  %v90_v10 = vpack.c.bf16 %v82_v8, %v82_v8  ;;  %v81_v12 = vld [vmem:[%s2564_s0 + $0x20] sm:$0xff] }
  0x3f   :  { %1898 = vmatpush3.bf16.msra.mxu0 %v2142_v22  ;;  %v2182_v6 = vld [vmem:[#allocation2 + $0x138] sm:$0xff]   ;;  %v83_v13 = vld [vmem:[%s2564_s0 + $0x30] sm:$0xff]  ;;  %v89_v14 = vpack.c.bf16 %v81_v12, %v81_v12  ;;  %v773_v16 = vld [vmem:[%s2567_s3] sm:$0xff] }
  0x40   :  { %1920 = vmatpush3.bf16.msra.mxu1 %v2143_v23  ;;  %1899 = vmatprep.subr.bf16.mxu0 %v2144_v24  ;;  %v2183_v7 = vld [vmem:[#allocation2 + $0x1b8] sm:$0xff]   ;;  %v91_v15 = vpack.c.bf16 %v83_v13, %v83_v13  ;;  %v774_v17 = vld [vmem:[%s2567_s3 + $0x8] sm:$0xff]  ;;  %v775_v18 = vld [vmem:[%s2567_s3 + $0x10] sm:$0xff] }
  0x41   :  { %1921 = vmatprep.subr.bf16.mxu1 %v2145_v25  ;;  %v84_v9 = vld [vmem:[%s2564_s0 + $0x38] sm:$0xff]  ;;  %v2070_v20 = vpack.c.bf16 %v774_v17, %v773_v16  ;;  %v777_v23 = vld [vmem:[%s2567_s3 + $0x20] sm:$0xff]  ;;  %v778_v24 = vld [vmem:[%s2567_s3 + $0x28] sm:$0xff] }
  0x42   :  { %v92_v11 = vpack.c.bf16 %v84_v9, %v84_v9  ;;  %v776_v21 = vld [vmem:[%s2567_s3 + $0x18] sm:$0xff]  ;;  %v2076_v25 = vpack.c.bf16 %v778_v24, %v777_v23  ;;  %v783_v32 = vld [vmem:[%s2567_s3 + $0x50] sm:$0xff]  ;;  %v785_v35 = vld [vmem:[%s2567_s3 + $0x60] sm:$0xff] }
  0x43   :  { %1900 = vmatpush3.bf16.msra.mxu0 %v2146_v26  ;;  %v2073_v22 = vpack.c.bf16 %v776_v21, %v775_v18  ;;  %v779_v26 = vld [vmem:[%s2567_s3 + $0x30] sm:$0xff]  ;;  %v784_v33 = vld [vmem:[%s2567_s3 + $0x58] sm:$0xff]  ;;  %v786_v36 = vld [vmem:[%s2567_s3 + $0x68] sm:$0xff] }
  0x44   :  { %1922 = vmatpush3.bf16.msra.mxu1 %v2147_v27  ;;  %1901 = vmatprep.subr.bf16.mxu0 %v2148_v28  ;;  %v780_v27 = vld [vmem:[%s2567_s3 + $0x38] sm:$0xff]  ;;  %v2085_v34 = vpack.c.bf16 %v784_v33, %v783_v32  ;;  %v787_v38 = vld [vmem:[%s2567_s3 + $0x70] sm:$0xff]  ;;  %v955_v12 = vld [vmem:[%s2571_s7 + $0x8] sm:$0xff] }
  0x45   :  { %1923 = vmatprep.subr.bf16.mxu1 %v2149_v29  ;;  %v2079_v28 = vpack.c.bf16 %v780_v27, %v779_v26  ;;  %v781_v29 = vld [vmem:[%s2567_s3 + $0x40] sm:$0xff]  ;;  %v870_v8 = vld [vmem:[%s2569_s5 + $0x18] sm:$0xff]  ;;  %v1039_v26 = vld [vmem:[%s2573_s9 + $0x10] sm:$0xff] }
  0x46   :  { %v1037_v18 = vld [vmem:[%s2573_s9] sm:$0xff]  ;;  %v1040_v27 = vld [vmem:[%s2573_s9 + $0x18] sm:$0xff] }
  0x47   :  { %1902 = vmatpush3.bf16.msra.mxu0 %v2150_v30  ;;  %v782_v30 = vld [vmem:[%s2567_s3 + $0x48] sm:$0xff]  ;;  %v1817_v21 = vld [vmem:[%s2570_s6] ss:$0 sm:$0xff] }
  0x48   :  { %1924 = vmatpush3.bf16.msra.mxu1 %v2151_v31  ;;  %1931 = vmatprep.subr.bf16.mxu0 %v2152_v40  ;;  %v2082_v31 = vpack.c.bf16 %v782_v30, %v781_v29  ;;  %v1123_v29 = vld [vmem:[#allocation5] sm:$0xff] }
  0x49   :  { %1953 = vmatprep.subr.bf16.mxu1 %v2153_v41  ;;  %v2288_v41 = vmov 0.0   ;;  %v1127_v30 = vld [vmem:[#allocation5 + $0x20] sm:$0xff] }
  0x4a   :  { %645 = vmatmul.mubr.bf16.vlgmr.msra.gmra.mrb[0].mxu0 %v85_v37  ;;  %v2088_v37 = vpack.c.bf16 %v786_v36, %v785_v35  ;;  %v1823_v32 = vcombine.low %v1123_v29, %v1127_v30  ;;  %v1824_v33 = vcombine.high %v1123_v29, %v1127_v30  ;;  %v1184_v30 = vld [vmem:[#allocation5 + $0x1e8] sm:$0xff] }
  0x4b   :  { %685 = vmatmul.mubr.bf16.vlgmr.msra.gmra.mrb[0].mxu1 %v87_v39  ;;  %1932 = vmatpush3.bf16.msra.mxu0 %v2154_v42  ;;  %v788_v39 = vld [vmem:[%s2567_s3 + $0x78] sm:$0xff]  ;;  %v867_v42 = vld [vmem:[%s2569_s5] sm:$0xff] }
  0x4c   :  { %1954 = vmatpush3.bf16.msra.mxu1 %v2155_v43  ;;  %1933 = vmatprep.subr.bf16.mxu0 %v2156_v44  ;;  %v2091_v40 = vpack.c.bf16 %v788_v39, %v787_v38  ;;  %v868_v43 = vld [vmem:[%s2569_s5 + $0x8] sm:$0xff] }
  0x4d   :  { %1955 = vmatprep.subr.bf16.mxu1 %v2157_v45  ;;  %724 = vmatprep.mubr.bf16.mxu0 %v90_v10  ;;  %v2094_v44 = vpack.c.bf16 %v868_v43, %v867_v42  ;;  %v1816_v10 = vld [vmem:[%s2568_s4] ss:$0 sm:$0xff] }
  0x4e   :  { %764 = vmatprep.mubr.bf16.mxu1 %v92_v11  ;;  %v954_v11 = vld [vmem:[%s2571_s7] sm:$0xff] }
  0x4f   :  { %1934 = vmatpush3.bf16.msra.mxu0 %v2158_v46  ;;  %v2100_v16 = vpack.c.bf16 %v955_v12, %v954_v11  ;;  %v1155_v12 = vld [vmem:[#allocation5 + $0x100] sm:$0xff] }
  0x50   :  { %1956 = vmatpush3.bf16.msra.mxu1 %v2159_v47  ;;  %1935 = vmatprep.subr.bf16.mxu0 %v2160_v48  ;;  %v1751_v47 = vld [vmem:[%s2566_s2] ss:$0 sm:$0xff] }
  0x51   :  { %1957 = vmatprep.subr.bf16.mxu1 %v2161_v49 }
  0x53   :  { %1936 = vmatpush3.bf16.msra.mxu0 %v2162_v50 }
  0x54   :  { %1958 = vmatpush3.bf16.msra.mxu1 %v2163_v51  ;;  %1937 = vmatprep.subr.bf16.mxu0 %v2164_v52 }
  0x55   :  { %1959 = vmatprep.subr.bf16.mxu1 %v2165_v53 }
  0x57   :  { %1938 = vmatpush3.bf16.msra.mxu0 %v2166_v54 }
  0x58   :  { %1960 = vmatpush3.bf16.msra.mxu1 %v2167_v55  ;;  %1939 = vmatprep.subr.bf16.mxu0 %v2168_v56 }
  0x59   :  { %1961 = vmatprep.subr.bf16.mxu1 %v2169_v57 }
  0x5b   :  { %1940 = vmatpush3.bf16.msra.mxu0 %v2170_v58 }
  0x5c   :  { %1962 = vmatpush3.bf16.msra.mxu1 %v2171_v59  ;;  %1941 = vmatprep.subr.bf16.mxu0 %v2172_v60 }
  0x5d   :  { %1963 = vmatprep.subr.bf16.mxu1 %v2173_v61 }
  0x5f   :  { %1942 = vmatpush3.bf16.msra.mxu0 %v2174_v62 }
  0x60   :  { %1964 = vmatpush3.bf16.msra.mxu1 %v2175_v63  ;;  %1943 = vmatprep.subr.bf16.mxu0 %v2176_v0 }
  0x61   :  { %1965 = vmatprep.subr.bf16.mxu1 %v2177_v1 }
  0x63   :  { %1944 = vmatpush3.bf16.msra.mxu0 %v2178_v2 }
  0x64   :  { %1966 = vmatpush3.bf16.msra.mxu1 %v2179_v3  ;;  %1945 = vmatprep.subr.bf16.mxu0 %v2180_v4 }
  0x65   :  { %1967 = vmatprep.subr.bf16.mxu1 %v2181_v5 }
  0x67   :  { %1946 = vmatpush3.bf16.msra.mxu0 %v2182_v6 }
  0x68   :  { %1968 = vmatpush3.bf16.msra.mxu1 %v2183_v7  ;;  %2069 = vmatprep.subr.bf16.mxu0 %v2286_v19  ;;  %v869_v7 = vld [vmem:[%s2569_s5 + $0x10] sm:$0xff] }
  0x69   :  { %2093 = vmatprep.subr.bf16.mxu1 %v2286_v19  ;;  %v2097_v9 = vpack.c.bf16 %v870_v8, %v869_v7  ;;  %v1147_v8 = vld [vmem:[#allocation5 + $0xc0] sm:$0xff] }
  0x6a   :  { %725 = vmatmul.mubr.bf16.vlgmr.msra.gmra.mrb[4].mxu0 %v89_v14 }
  0x6b   :  { %765 = vmatmul.mubr.bf16.vlgmr.msra.gmra.mrb[4].mxu1 %v91_v15  ;;  %2071 = vmatpush3.bf16.msra.mxu0 %v2070_v20  ;;  %v1038_v20 = vld [vmem:[%s2573_s9 + $0x8] sm:$0xff] }
  0x6c   :  { %2072 = vmatprep.subr.bf16.mxu0 %v2286_v19  ;;  %2037 = vmatprep.mubr.msk.f32.mxu0 %vm2287_vm0, %v2288_v41  ;;  %v2103_v23 = vpack.c.bf16 %v1038_v20, %v1037_v18 }
  0x6d   :  { %2048 = vmatprep.mubr.msk.f32.mxu1 %vm2287_vm0, %v2288_v41  ;;  %2095 = vmatpush3.bf16.msra.mxu1 %v2094_v44  ;;  %v1148_v44 = vld [vmem:[#allocation5 + $0xc8] sm:$0xff] }
  0x6e   :  { %2096 = vmatprep.subr.bf16.mxu1 %v2286_v19 }
  0x6f   :  { %2074 = vmatpush3.bf16.msra.mxu0 %v2073_v22 }
  0x70   :  { %2075 = vmatprep.subr.bf16.mxu0 %v2286_v19 }
  0x71   :  { %2098 = vmatpush3.bf16.msra.mxu1 %v2097_v9  ;;  %v1151_v9 = vld [vmem:[#allocation5 + $0xe0] sm:$0xff] }
  0x72   :  { %2099 = vmatprep.subr.bf16.mxu1 %v2286_v19  ;;  %v1848_v11 = vcombine.high %v1147_v8, %v1151_v9 }
  0x73   :  { %2077 = vmatpush3.bf16.msra.mxu0 %v2076_v25 }
  0x74   :  { %2078 = vmatprep.subr.bf16.mxu0 %v2286_v19 }
  0x77   :  { %2080 = vmatpush3.bf16.msra.mxu0 %v2079_v28  ;;  %v2106_v28 = vpack.c.bf16 %v1040_v27, %v1039_v26  ;;  %v1179_v26 = vld [vmem:[#allocation5 + $0x1c0] sm:$0xff] }
  0x78   :  { %2081 = vmatprep.subr.bf16.mxu0 %v2286_v19  ;;  %v1183_v27 = vld [vmem:[#allocation5 + $0x1e0] sm:$0xff] }
  0x79   :  { %v1880_v29 = vcombine.high %v1179_v26, %v1183_v27 }
  0x7b   :  { %2083 = vmatpush3.bf16.msra.mxu0 %v2082_v31  ;;  %v1124_v31 = vld [vmem:[#allocation5 + $0x8] sm:$0xff] }
  0x7c   :  { %2084 = vmatprep.subr.bf16.mxu0 %v2286_v19 }
  0x7f   :  { %2086 = vmatpush3.bf16.msra.mxu0 %v2085_v34  ;;  %v1128_v34 = vld [vmem:[#allocation5 + $0x28] sm:$0xff] }
  0x80   :  { %2087 = vmatprep.subr.bf16.mxu0 %v2286_v19  ;;  %v1825_v35 = vcombine.low %v1124_v31, %v1128_v34  ;;  %v1826_v36 = vcombine.high %v1124_v31, %v1128_v34  ;;  %v1879_v31 = vcombine.low %v1179_v26, %v1183_v27  ;;  %v1125_v34 = vld [vmem:[#allocation5 + $0x10] sm:$0xff]  ;;  %v1178_v26 = vld [vmem:[#allocation5 + $0x1b8] sm:$0xff] }
  0x83   :  { %2089 = vmatpush3.bf16.msra.mxu0 %v2088_v37  ;;  %v1132_v37 = vld [vmem:[#allocation5 + $0x48] sm:$0xff] }
  0x84   :  { %2090 = vmatprep.subr.bf16.mxu0 %v2286_v19 }
  0x87   :  { %2092 = vmatpush3.bf16.msra.mxu0 %v2091_v40  ;;  %v1140_v40 = vld [vmem:[#allocation5 + $0x88] sm:$0xff] }
  0x88   :  { %1590 = vmatprep.subr.bf16.mxu0 %v1826_v36  ;;  %v1126_v36 = vld [vmem:[#allocation5 + $0x18] sm:$0xff] }
 0x11d   :  { %v1903_v45 = vpop.f32.mrb[0].mxu0 }
 0x11e   :  { %v1925_v46 = vpop.f32.mrb[0].mxu1  ;;  %v1904_v48 = vpop.f32.mrb[1].mxu0 }
 0x11f   :  { %v1926_v49 = vpop.f32.mrb[1].mxu1  ;;  %v1905_v50 = vadd.f32 %v1904_v48, %v1903_v45  ;;  %v1906_v52 = vpop.f32.mrb[2].mxu0  ;;  %v1152_v45 = vld [vmem:[#allocation5 + $0xe8] sm:$0xff] }
 0x120   :  { %v1927_v51 = vadd.f32 %v1926_v49, %v1925_v46  ;;  %v1928_v53 = vpop.f32.mrb[2].mxu1  ;;  %v1907_v54 = vpop.f32.mrb[3].mxu0  ;;  %v1850_v46 = vcombine.high %v1148_v44, %v1152_v45  ;;  %v1156_v48 = vld [vmem:[#allocation5 + $0x108] sm:$0xff] }
 0x121   :  { %v1929_v55 = vpop.f32.mrb[3].mxu1  ;;  %v647_v56 = vadd.f32 %v1905_v50, %v1751_v47  ;;  %v1849_v47 = vcombine.low %v1148_v44, %v1152_v45  ;;  %v1160_v49 = vld [vmem:[#allocation5 + $0x128] sm:$0xff] }
 0x122   :  { %v1858_v50 = vcombine.high %v1156_v48, %v1160_v49  ;;  %v1164_v52 = vld [vmem:[#allocation5 + $0x148] sm:$0xff] }
 0x123   :  { %v687_v57 = vadd.f32 %v1927_v51, %v647_v56  ;;  %v1857_v51 = vcombine.low %v1156_v48, %v1160_v49  ;;  %v1168_v53 = vld [vmem:[#allocation5 + $0x168] sm:$0xff]  ;;  %v1134_v48 = vld [vmem:[#allocation5 + $0x58] sm:$0xff] }
 0x124   :  { %v1866_v54 = vcombine.high %v1164_v52, %v1168_v53  ;;  %v1865_v55 = vcombine.low %v1164_v52, %v1168_v53  ;;  %v1172_v56 = vld [vmem:[#allocation5 + $0x188] sm:$0xff]  ;;  %v1138_v49 = vld [vmem:[#allocation5 + $0x78] sm:$0xff] }
 0x125   :  { %v1838_v53 = vcombine.high %v1134_v48, %v1138_v49 }
 0x13d   :  { %v1947_v58 = vpop.f32.mrb[4].mxu0 }
 0x13e   :  { %v1969_v59 = vpop.f32.mrb[4].mxu1  ;;  %v1948_v60 = vpop.f32.mrb[5].mxu0 }
 0x13f   :  { %v1949_v61 = vadd.f32 %v1948_v60, %v1947_v58  ;;  %v1970_v62 = vpop.f32.mrb[5].mxu1  ;;  %v1950_v63 = vpop.f32.mrb[6].mxu0  ;;  %v1819_v60 = vld [vmem:[%s2572_s8] ss:$0 sm:$0xff] }
 0x140   :  { %v1971_v0 = vadd.f32 %v1970_v62, %v1969_v59  ;;  %v1972_v1 = vpop.f32.mrb[6].mxu1  ;;  %v1951_v2 = vpop.f32.mrb[7].mxu0  ;;  %v1131_v62 = vld [vmem:[#allocation5 + $0x40] sm:$0xff] }
 0x141   :  { %v727_v3 = vadd.f32 %v1949_v61, %v687_v57  ;;  %v1973_v4 = vpop.f32.mrb[7].mxu1  ;;  %v1176_v57 = vld [vmem:[#allocation5 + $0x1a8] sm:$0xff]  ;;  %v1135_v63 = vld [vmem:[#allocation5 + $0x60] sm:$0xff] }
 0x142   :  { %v1874_v58 = vcombine.high %v1172_v56, %v1176_v57  ;;  %v1873_v59 = vcombine.low %v1172_v56, %v1176_v57  ;;  %v1139_v4 = vld [vmem:[#allocation5 + $0x80] sm:$0xff]  ;;  %v1142_v56 = vld [vmem:[#allocation5 + $0x98] sm:$0xff] }
 0x143   :  { %v767_v5 = vadd.f32 %v1971_v0, %v727_v3  ;;  %v1832_v3 = vcombine.high %v1131_v62, %v1135_v63  ;;  %v1146_v57 = vld [vmem:[#allocation5 + $0xb8] sm:$0xff] }
 0x145   :  { %v772_v6 = vmax.f32 %v767_v5, 0.0  ;;  %v1143_v5 = vld [vmem:[#allocation5 + $0xa0] sm:$0xff] }
 0x146   :  { %v1840_v7 = vcombine.high %v1139_v4, %v1143_v5 }
 0x147   :  { %2038 = vmatmul.mubr.f32.vlgmr.msra.gmra.mrb[8].mxu0 %v772_v6  ;;  %v1831_v6 = vcombine.low %v1131_v62, %v1135_v63  ;;  %v1149_v62 = vld [vmem:[#allocation5 + $0xd0] sm:$0xff] }
 0x148   :  { %1591 = vmatpush1.bf16.msra.mxu0 %v1825_v35  ;;  %v1129_v35 = vld [vmem:[#allocation5 + $0x30] sm:$0xff] }
 0x149   :  { %v1153_v63 = vld [vmem:[#allocation5 + $0xf0] sm:$0xff] }
 0x21a   :  { %v862_v13 = vpop.f32.mrb[8].mxu0 }
 0x21b   :  { %v863_v14 = vadd.f32 %v1816_v10, %v862_v13  ;;  %v2039_v15 = vpop.f32.mrb[9].mxu0  ;;  %v1839_v10 = vcombine.low %v1139_v4, %v1143_v5  ;;  %v1159_v13 = vld [vmem:[#allocation5 + $0x120] sm:$0xff]  ;;  %v1852_v4 = vcombine.high %v1149_v62, %v1153_v63 }
 0x21c   :  { %v1856_v15 = vcombine.high %v1155_v12, %v1159_v13  ;;  %v1855_v18 = vcombine.low %v1155_v12, %v1159_v13 }
 0x21d   :  { %v866_v17 = vmax.f32 %v863_v14, 0.0  ;;  %v1847_v14 = vcombine.low %v1147_v8, %v1151_v9  ;;  %v1158_v8 = vld [vmem:[#allocation5 + $0x118] sm:$0xff] }
 0x21e   :  { %v1162_v9 = vld [vmem:[#allocation5 + $0x138] sm:$0xff] }
 0x21f   :  { %2049 = vmatmul.mubr.msk.f32.vlgmr.msra.gmra.mrb[8].mxu1 %vm878_vm1, %v866_v17  ;;  %v1167_v17 = vld [vmem:[#allocation5 + $0x160] sm:$0xff]  ;;  %v1862_v13 = vcombine.high %v1158_v8, %v1162_v9 }
 0x220   :  { %2101 = vmatpush3.bf16.msra.mxu1 %v2100_v16  ;;  %2055 = vmatprep.mubr.msk.f32.mxu1 %vm2287_vm0, %v2288_v41  ;;  %v1163_v16 = vld [vmem:[#allocation5 + $0x140] sm:$0xff] }
 0x221   :  { %2102 = vmatprep.subr.bf16.mxu1 %v2286_v19  ;;  %v1864_v20 = vcombine.high %v1163_v16, %v1167_v17 }
 0x2f2   :  { %v948_v22 = vpop.f32.mrb[8].mxu1 }
 0x2f3   :  { %v949_v24 = vadd.f32 %v1817_v21, %v948_v22  ;;  %v2050_v25 = vpop.f32.mrb[9].mxu1  ;;  %v1171_v21 = vld [vmem:[#allocation5 + $0x180] sm:$0xff] }
 0x2f4   :  { %v1175_v22 = vld [vmem:[#allocation5 + $0x1a0] sm:$0xff] }
 0x2f5   :  { %2056 = vmatmul.mubr.msk.f32.vlgmr.msra.gmra.mrb[10].mxu1 %vm952_vm2, %v949_v24  ;;  %953 = vst.msk [vmem:[#allocation7] sm:$0xff] %vm952_vm2, %v949_v24  ;;  %v1872_v24 = vcombine.high %v1171_v21, %v1175_v22  ;;  %v1871_v25 = vcombine.low %v1171_v21, %v1175_v22 }
 0x2f6   :  { %2104 = vmatpush3.bf16.msra.mxu1 %v2103_v23  ;;  %2066 = vmatprep.mubr.msk.f32.mxu1 %vm2287_vm0, %v2288_v41  ;;  %v1144_v41 = vld [vmem:[#allocation5 + $0xa8] sm:$0xff]  ;;  %v1863_v23 = vcombine.low %v1163_v16, %v1167_v17  ;;  %v1166_v16 = vld [vmem:[#allocation5 + $0x158] sm:$0xff] }
 0x2f7   :  { %2105 = vmatprep.subr.bf16.mxu1 %v2286_v19  ;;  %v1136_v19 = vld [vmem:[#allocation5 + $0x68] sm:$0xff]  ;;  %v1842_v42 = vcombine.high %v1140_v40, %v1144_v41  ;;  %v1841_v43 = vcombine.low %v1140_v40, %v1144_v41  ;;  %v1170_v17 = vld [vmem:[#allocation5 + $0x178] sm:$0xff] }
 0x2f8   :  { %v1834_v38 = vcombine.high %v1132_v37, %v1136_v19  ;;  %v1833_v39 = vcombine.low %v1132_v37, %v1136_v19  ;;  %v1827_v37 = vcombine.low %v1125_v34, %v1129_v35  ;;  %v1828_v19 = vcombine.high %v1125_v34, %v1129_v35  ;;  %v1186_v34 = vld [vmem:[#allocation5 + $0x1f8] sm:$0xff] }
 0x2f9   :  { %v1870_v22 = vcombine.high %v1166_v16, %v1170_v17 }
 0x2fa   :  { %2107 = vmatpush3.bf16.msra.mxu1 %v2106_v28  ;;  %1592 = vmatprep.subr.bf16.mxu0 %v1834_v38  ;;  %v1180_v28 = vld [vmem:[#allocation5 + $0x1c8] sm:$0xff]  ;;  %v1130_v38 = vld [vmem:[#allocation5 + $0x38] sm:$0xff] }
 0x2fb   :  { %1549 = vmatprep.subr.bf16.mxu1 %v1824_v33  ;;  %1593 = vmatpush1.bf16.msra.mxu0 %v1833_v39  ;;  %v1882_v33 = vcombine.high %v1180_v28, %v1184_v30  ;;  %v2289_v39 = vmov 0   ;;  %v1829_v40 = vcombine.low %v1126_v36, %v1130_v38  ;;  %v1830_v41 = vcombine.high %v1126_v36, %v1130_v38 }
 0x2fc   :  { %1594 = vmatprep.subr.bf16.mxu0 %v1842_v42  ;;  %1622 = vmatprep.mubr.bf16.mxu0 %v2289_v39  ;;  %v1821_v42 = vld [vmem:[%s2574_s10] ss:$0 sm:$0xff]  ;;  %s2290_s10 = smov [#allocation7]  }
 0x2fd   :  { %s1727_s21 = sshll.u32 %s2290_s10, 4  ;;  %s1728_s21 = int_to_ptr.vmem [resolvable:$true] %s1727_s21 }
 0x2fe   :  { %s2228_s3 = scalar_lea.vmem %s1728_s21, 128  ;;  %p2233_p3 = scmp.lt.s32.totalorder %s1728_s21, %s1728_s21 }
 0x2ff   :  { %1595 = vmatpush1.bf16.msra.mxu0 %v1841_v43  ;;  %p2229_p2 = scmp.ne.s32.totalorder %s1728_s21, %s2228_s3  ;;  %p2234_p4 = scmp.lt.s32.totalorder %s2228_s3, %s2228_s3 }
 0x300   :  { %1596 = vmatprep.subr.bf16.mxu0 %v1850_v46  ;;  %v1133_v46 = vld [vmem:[#allocation5 + $0x50] sm:$0xff] }
 0x301   :  { %p2235_p5 = por %p2234_p4, %p2233_p3 }
 0x303   :  { %1597 = vmatpush1.bf16.msra.mxu0 %v1849_v47  ;;  %v1137_v47 = vld [vmem:[#allocation5 + $0x70] sm:$0xff]  ;;  %p2236_p6 = pnand %p2235_p5, %p2229_p2 }
 0x304   :  { %1598 = vmatprep.subr.bf16.mxu0 %v1858_v50  ;;  %v1836_v52 = vcombine.high %v1133_v46, %v1137_v47 }
 0x307   :  { %1599 = vmatpush1.bf16.msra.mxu0 %v1857_v51 }
 0x308   :  { %1600 = vmatprep.subr.bf16.mxu0 %v1866_v54  ;;  %v1141_v54 = vld [vmem:[#allocation5 + $0x90] sm:$0xff] }
 0x30b   :  { %1601 = vmatpush1.bf16.msra.mxu0 %v1865_v55  ;;  %v1145_v55 = vld [vmem:[#allocation5 + $0xb0] sm:$0xff] }
 0x30c   :  { %1602 = vmatprep.subr.bf16.mxu0 %v1874_v58  ;;  %v1835_v58 = vcombine.low %v1133_v46, %v1137_v47 }
 0x30f   :  { %1603 = vmatpush1.bf16.msra.mxu0 %v1873_v59  ;;  %v1837_v59 = vcombine.low %v1134_v48, %v1138_v49 }
 0x310   :  { %1604 = vmatprep.subr.bf16.mxu0 %v1882_v33  ;;  %v1182_v33 = vld [vmem:[#allocation5 + $0x1d8] sm:$0xff] }
 0x3c8   :  { %v1032_v61 = vpop.f32.mrb[10].mxu1 }
 0x3c9   :  { %v1033_v0 = vadd.f32 %v1819_v60, %v1032_v61  ;;  %v2057_v1 = vpop.f32.mrb[11].mxu1  ;;  %v1844_v60 = vcombine.high %v1141_v54, %v1145_v55  ;;  %v1846_v61 = vcombine.high %v1142_v56, %v1146_v57 }
 0x3ca   :  { %v1154_v1 = vld [vmem:[#allocation5 + $0xf8] sm:$0xff] }
 0x3cb   :  { %v1036_v2 = vmax.f32 %v1033_v0, 0.0  ;;  %v1150_v0 = vld [vmem:[#allocation5 + $0xd8] sm:$0xff] }
 0x3cc   :  { %v1854_v5 = vcombine.high %v1150_v0, %v1154_v1 }
 0x3cd   :  { %2067 = vmatmul.mubr.msk.f32.vlgmr.msra.gmra.mrb[12].mxu1 %vm878_vm1, %v1036_v2  ;;  %v1843_v2 = vcombine.low %v1141_v54, %v1145_v55 }
 0x3ce   :  { %1550 = vmatpush1.bf16.msra.mxu1 %v1823_v32  ;;  %v1881_v32 = vcombine.low %v1180_v28, %v1184_v30  ;;  %1581 = vmatprep.mubr.bf16.mxu1 %v2289_v39  ;;  %v1869_v28 = vcombine.low %v1166_v16, %v1170_v17 }
 0x3cf   :  { %1551 = vmatprep.subr.bf16.mxu1 %v1832_v3  ;;  %v1845_v3 = vcombine.low %v1142_v56, %v1146_v57 }
 0x3d0   :  { %1605 = vmatpush1.bf16.msra.mxu0 %v1881_v32  ;;  %v1185_v32 = vld [vmem:[#allocation5 + $0x1f0] sm:$0xff] }
 0x3d1   :  { %1672 = vmatprep.subr.bf16.mxu0 %v1830_v41 }
 0x3d2   :  { %1552 = vmatpush1.bf16.msra.mxu1 %v1831_v6  ;;  %v1157_v6 = vld [vmem:[#allocation5 + $0x110] sm:$0xff] }
 0x3d3   :  { %1553 = vmatprep.subr.bf16.mxu1 %v1840_v7  ;;  %v1161_v7 = vld [vmem:[#allocation5 + $0x130] sm:$0xff] }
 0x3d4   :  { %v1860_v12 = vcombine.high %v1157_v6, %v1161_v7 }
 0x3d6   :  { %1554 = vmatpush1.bf16.msra.mxu1 %v1839_v10  ;;  %v1851_v10 = vcombine.low %v1149_v62, %v1153_v63 }
 0x3d7   :  { %1555 = vmatprep.subr.bf16.mxu1 %v1848_v11  ;;  %v1853_v11 = vcombine.low %v1150_v0, %v1154_v1 }
 0x3da   :  { %1556 = vmatpush1.bf16.msra.mxu1 %v1847_v14  ;;  %v1165_v14 = vld [vmem:[#allocation5 + $0x150] sm:$0xff] }
 0x3db   :  { %1557 = vmatprep.subr.bf16.mxu1 %v1856_v15  ;;  %v1169_v15 = vld [vmem:[#allocation5 + $0x170] sm:$0xff] }
 0x3dc   :  { %v1868_v21 = vcombine.high %v1165_v14, %v1169_v15  ;;  %v1867_v27 = vcombine.low %v1165_v14, %v1169_v15 }
 0x3de   :  { %1558 = vmatpush1.bf16.msra.mxu1 %v1855_v18  ;;  %v1859_v18 = vcombine.low %v1157_v6, %v1161_v7 }
 0x3df   :  { %1559 = vmatprep.subr.bf16.mxu1 %v1864_v20  ;;  %v1861_v20 = vcombine.low %v1158_v8, %v1162_v9 }
 0x3e2   :  { %1560 = vmatpush1.bf16.msra.mxu1 %v1863_v23  ;;  %v1173_v23 = vld [vmem:[#allocation5 + $0x190] sm:$0xff] }
 0x3e3   :  { %1561 = vmatprep.subr.bf16.mxu1 %v1872_v24  ;;  %v1177_v24 = vld [vmem:[#allocation5 + $0x1b0] sm:$0xff] }
 0x3e4   :  { %v1875_v35 = vcombine.low %v1173_v23, %v1177_v24 }
 0x3e6   :  { %1562 = vmatpush1.bf16.msra.mxu1 %v1871_v25  ;;  %v1174_v25 = vld [vmem:[#allocation5 + $0x198] sm:$0xff] }
 0x3e7   :  { %1563 = vmatprep.subr.bf16.mxu1 %v1880_v29  ;;  %v1876_v29 = vcombine.high %v1173_v23, %v1177_v24  ;;  %v1878_v30 = vcombine.high %v1174_v25, %v1178_v26  ;;  %v1877_v36 = vcombine.low %v1174_v25, %v1178_v26 }
 0x3ea   :  { %1564 = vmatpush1.bf16.msra.mxu1 %v1879_v31  ;;  %v1181_v31 = vld [vmem:[#allocation5 + $0x1d0] sm:$0xff] }
 0x3eb   :  { %1631 = vmatprep.subr.bf16.mxu1 %v1828_v19  ;;  %v1886_v19 = vcombine.high %v1182_v33, %v1186_v34  ;;  %v1883_v38 = vcombine.low %v1181_v31, %v1185_v32 }
 0x4a0   :  { %v1117_v43 = vpop.f32.mrb[12].mxu1 }
 0x4a1   :  { %v1118_v44 = vadd.f32 %v1821_v42, %v1117_v43  ;;  %v2068_v45 = vpop.f32.mrb[13].mxu1 }
 0x4a3   :  { %v1121_v50 = vmax.f32 %v1118_v44, 0.0 }
 0x4a5   :  { %v2531_v51 = vpack.c.bf16 %v1121_v50, %v1121_v50 }
 0x4a7   :  { %1582 = vmatmul.mubr.bf16.vlgmr.msra.gmra.mrb[16].mxu1 %v2531_v51  ;;  %1623 = vmatmul.mubr.bf16.vlgmr.msra.gmra.mrb[12].mxu0 %v2531_v51 }
 0x4a8   :  { %1632 = vmatpush1.bf16.msra.mxu1 %v1827_v37  ;;  %1673 = vmatpush1.bf16.msra.mxu0 %v1829_v40  ;;  %v1884_v37 = vcombine.high %v1181_v31, %v1185_v32 }
 0x4a9   :  { %1633 = vmatprep.subr.bf16.mxu1 %v1836_v52  ;;  %1674 = vmatprep.subr.bf16.mxu0 %v1838_v53 }
 0x4aa   :  { %1663 = vmatprep.mubr.bf16.mxu1 %v2289_v39  ;;  %1704 = vmatprep.mubr.bf16.mxu0 %v2289_v39  ;;  %v1885_v39 = vcombine.low %v1182_v33, %v1186_v34 }
 0x4ac   :  { %1634 = vmatpush1.bf16.msra.mxu1 %v1835_v58  ;;  %1675 = vmatpush1.bf16.msra.mxu0 %v1837_v59 }
 0x4ad   :  { %1635 = vmatprep.subr.bf16.mxu1 %v1844_v60  ;;  %1676 = vmatprep.subr.bf16.mxu0 %v1846_v61 }
 0x4b0   :  { %1636 = vmatpush1.bf16.msra.mxu1 %v1843_v2  ;;  %1677 = vmatpush1.bf16.msra.mxu0 %v1845_v3 }
 0x4b1   :  { %1637 = vmatprep.subr.bf16.mxu1 %v1852_v4  ;;  %1678 = vmatprep.subr.bf16.mxu0 %v1854_v5 }
 0x4b4   :  { %1638 = vmatpush1.bf16.msra.mxu1 %v1851_v10  ;;  %1679 = vmatpush1.bf16.msra.mxu0 %v1853_v11 }
 0x4b5   :  { %1639 = vmatprep.subr.bf16.mxu1 %v1860_v12  ;;  %1680 = vmatprep.subr.bf16.mxu0 %v1862_v13 }
 0x4b8   :  { %1640 = vmatpush1.bf16.msra.mxu1 %v1859_v18  ;;  %1681 = vmatpush1.bf16.msra.mxu0 %v1861_v20 }
 0x4b9   :  { %1641 = vmatprep.subr.bf16.mxu1 %v1868_v21  ;;  %1682 = vmatprep.subr.bf16.mxu0 %v1870_v22 }
 0x4bc   :  { %1642 = vmatpush1.bf16.msra.mxu1 %v1867_v27  ;;  %1683 = vmatpush1.bf16.msra.mxu0 %v1869_v28 }
 0x4bd   :  { %1643 = vmatprep.subr.bf16.mxu1 %v1876_v29  ;;  %1684 = vmatprep.subr.bf16.mxu0 %v1878_v30 }
 0x4c0   :  { %1644 = vmatpush1.bf16.msra.mxu1 %v1875_v35  ;;  %1685 = vmatpush1.bf16.msra.mxu0 %v1877_v36 }
 0x4c1   :  { %1645 = vmatprep.subr.bf16.mxu1 %v1884_v37  ;;  %1686 = vmatprep.subr.bf16.mxu0 %v1886_v19 }
 0x4c4   :  { %1646 = vmatpush1.bf16.msra.mxu1 %v1883_v38  ;;  %1687 = vmatpush1.bf16.msra.mxu0 %v1885_v39 }
 0x4c7   :  { %1664 = vmatmul.mubr.bf16.vlgmr.msra.gmra.mrb[20].mxu1 %v2531_v51  ;;  %1705 = vmatmul.mubr.bf16.vlgmr.msra.gmra.mrb[16].mxu0 %v2531_v51 }
 0x4c8   :  { %2239 = shalt.err (!%p2236_p6)
}
 0x4c9   :  { %s2240_s30 = scalar_lea.hbm %s2577_s13, 128 }
 0x4ca   :  { %p2241_p7 = scmp.ne.s32.totalorder %s2577_s13, %s2240_s30  ;;  %p2244_p8 = scmp.lt.u32.totalorder %s2240_s30, %s2577_s13 }
 0x4cc   :  { %p2246_p9 = pnand %p2244_p8, %p2241_p7 }
 0x4ce   :  { %2249 = shalt.err (!%p2246_p9)
}
 0x4cf   :  { %1730 = dma.vmem_to_hbm [thread:$0]  %s1728_s21, 128, %s2577_s13, [#allocation4]   ;;  %v1189_v40 = vlaneseq  ;;  %v1187_v44 = vld [vmem:[%s2576_s12] sm:$0xff] }
 0x4d0   :  { %s2291_s12 = smov [#allocation8]  }
 0x4d1   :  { %v1190_v41 = vshrl.u32 %v1189_v40, 7  ;;  %s1737_s13 = sshll.u32 %s2291_s12, 4  ;;  %s1738_s13 = int_to_ptr.vmem [resolvable:$true] %s1737_s13 }
 0x4d2   :  { %s2250_s4 = scalar_lea.vmem %s1738_s13, 1024  ;;  %p2255_p11 = scmp.lt.s32.totalorder %s1738_s13, %s1738_s13 }
 0x4d3   :  { %v1191_v42 = vsub.s32 0, %v1190_v41  ;;  %v1199_v43 = vsub.s32 2, %v1190_v41  ;;  %v1195_v45 = vsub.s32 1, %v1190_v41  ;;  %v1203_v46 = vsub.s32 3, %v1190_v41  ;;  %p2251_p10 = scmp.ne.s32.totalorder %s1738_s13, %s2250_s4  ;;  %p2256_p12 = scmp.lt.s32.totalorder %s2250_s4, %s2250_s4 }
 0x4d4   :  { %v1207_v63 = vsub.s32 4, %v1190_v41  ;;  %v1215_v0 = vsub.s32 6, %v1190_v41  ;;  %v1211_v1 = vsub.s32 5, %v1190_v41  ;;  %v1219_v2 = vsub.s32 7, %v1190_v41 }
 0x4d5   :  { %v1192_v47 = vrot.slane %v1187_v44, %v1191_v42  ;;  %v1200_v48 = vrot.slane %v1187_v44, %v1199_v43  ;;  %v1196_v49 = vrot.slane %v1187_v44, %v1195_v45  ;;  %v1204_v50 = vrot.slane %v1187_v44, %v1203_v46  ;;  %p2257_p13 = por %p2256_p12, %p2255_p11 }
 0x4d6   :  { %v1208_v3 = vrot.slane %v1187_v44, %v1207_v63  ;;  %v1216_v4 = vrot.slane %v1187_v44, %v1215_v0  ;;  %v1212_v5 = vrot.slane %v1187_v44, %v1211_v1  ;;  %v1220_v6 = vrot.slane %v1187_v44, %v1219_v2 }
 0x4d7   :  { %p2258_p0 = pnand %p2257_p13, %p2251_p10 }
 0x57a   :  { %v1583_v51 = vpop.f32.mrb[16].mxu1  ;;  %v1624_v52 = vpop.f32.mrb[12].mxu0 }
 0x57b   :  { %v1584_v53 = vadd.f32 %v1583_v51, %v1192_v47  ;;  %v1625_v54 = vadd.f32 %v1624_v52, %v1200_v48  ;;  %v1585_v55 = vpop.f32.mrb[17].mxu1  ;;  %v1626_v56 = vpop.f32.mrb[13].mxu0 }
 0x57c   :  { %v1586_v57 = vadd.f32 %v1585_v55, %v1196_v49  ;;  %v1627_v58 = vadd.f32 %v1626_v56, %v1204_v50  ;;  %v1587_v59 = vpop.f32.mrb[18].mxu1  ;;  %v1628_v60 = vpop.f32.mrb[14].mxu0 }
 0x57d   :  { %1713 = vst [vmem:[#allocation8] sm:$0xff] %v1584_v53  ;;  %1715 = vst [vmem:[#allocation8 + $0x10] sm:$0xff] %v1625_v54  ;;  %v1588_v61 = vpop.f32.mrb[19].mxu1  ;;  %v1629_v62 = vpop.f32.mrb[15].mxu0 }
 0x57e   :  { %1714 = vst [vmem:[#allocation8 + $0x8] sm:$0xff] %v1586_v57  ;;  %1716 = vst [vmem:[#allocation8 + $0x18] sm:$0xff] %v1627_v58 }
 0x59a   :  { %v1665_v7 = vpop.f32.mrb[20].mxu1  ;;  %v1706_v8 = vpop.f32.mrb[16].mxu0 }
 0x59b   :  { %v1666_v9 = vadd.f32 %v1665_v7, %v1208_v3  ;;  %v1707_v10 = vadd.f32 %v1706_v8, %v1216_v4  ;;  %v1667_v11 = vpop.f32.mrb[21].mxu1  ;;  %v1708_v12 = vpop.f32.mrb[17].mxu0 }
 0x59c   :  { %v1668_v13 = vadd.f32 %v1667_v11, %v1212_v5  ;;  %v1709_v14 = vadd.f32 %v1708_v12, %v1220_v6  ;;  %v1669_v15 = vpop.f32.mrb[22].mxu1  ;;  %v1710_v16 = vpop.f32.mrb[18].mxu0 }
 0x59d   :  { %1717 = vst [vmem:[#allocation8 + $0x20] sm:$0xff] %v1666_v9  ;;  %1719 = vst [vmem:[#allocation8 + $0x30] sm:$0xff] %v1707_v10  ;;  %v1670_v17 = vpop.f32.mrb[23].mxu1  ;;  %v1711_v18 = vpop.f32.mrb[19].mxu0 }
 0x59e   :  { %1718 = vst [vmem:[#allocation8 + $0x28] sm:$0xff] %v1668_v13  ;;  %1720 = vst [vmem:[#allocation8 + $0x38] sm:$0xff] %v1709_v14 }
 0x59f   :  { %2261 = shalt.err (!%p2258_p0)
}
 0x5a0   :  { %s2262_s7 = scalar_lea.hbm %s2578_s14, 1024 }
 0x5a1   :  { %p2263_p1 = scmp.ne.s32.totalorder %s2578_s14, %s2262_s7  ;;  %p2266_p2 = scmp.lt.u32.totalorder %s2262_s7, %s2578_s14 }
 0x5a3   :  { %p2268_p3 = pnand %p2266_p2, %p2263_p1 }
 0x5a5   :  { %2271 = shalt.err (!%p2268_p3)
}
 0x5a6   :  { %1740 = dma.vmem_to_hbm [thread:$0]  %s1738_s13, 1024, %s2578_s14, [#allocation9]  }
 0x5a7   :  { %2276 = dma.done.wait [#allocation4], 128  }
 0x5a8   :  { %2277 = vsyncadd [#allocation4], 4294967168 }
 0x5a9   :  { %2278 = dma.done.wait [#allocation9], 1024  }
 0x5aa   :  { %2279 = vsyncadd [#allocation9], 4294966272 }
 0x5ab   :  { %1747 = vsyncpa [#allocation3], 1 }
 0x5ac   :  { %1748 = vsyncpa [#allocation6], 1 }
 0x5ad   :  { %1749 = vsyncpa [#allocation4], 1 }
 0x5ae   :  { %1750 = vsyncpa [#allocation9], 1 }

</bundles_post_ra>
